<compile_context>
chip_gen: v7x
topology: tpu7x:2x2x1
jax: 0.10.0
libtpu: 0.0.40
codegen_flags: <defaults>
</compile_context>

<pallas_src>
import functools

import numpy as np
import jax
import jax.numpy as jnp
from jax.experimental import pallas as pl
from jax.experimental.pallas import tpu as pltpu


# --------------------------------------------------------------------------
# Kernels
# --------------------------------------------------------------------------
def _se_kernel_matmul(x_ref, pool_ref, exp_ref, w1_ref, b1_ref, w2_ref, b2_ref,
                      o_ref, *, chunk, num_chunks):
    """Small-C path. x_ref/o_ref: (bt, CT_pad) lane-dense batch tile.
    pool_ref: (CT_pad, C) with 1/T baked in; exp_ref: (C, CT_pad) 0/1."""
    # squeeze: per-channel mean as one MXU matmul (no cross-lane relayout).
    y = jnp.dot(x_ref[...], pool_ref[...],
                preferred_element_type=jnp.float32)                    # (bt, C)

    # excitation: fc1 + relu, fc2 + sigmoid.
    h = jnp.dot(y, w1_ref[...], preferred_element_type=jnp.float32) + b1_ref[...]
    h = jnp.maximum(h, 0.0)                                            # (bt, H)
    s = jnp.dot(h, w2_ref[...], preferred_element_type=jnp.float32) + b2_ref[...]
    s = jax.nn.sigmoid(s)                                              # (bt, C)

    # scale: expand matmul fused with the multiply, chunked over the lane dim
    # so no full (bt, CT) `scale` temporary is materialized.
    if num_chunks == 1:
        scale = jnp.dot(s, exp_ref[...], preferred_element_type=jnp.float32)
        o_ref[...] = x_ref[...] * scale
    else:
        def body(c, carry):
            j = pl.multiple_of(c * chunk, chunk)                 # 128-multiple
            sc = jnp.dot(s, exp_ref[:, pl.ds(j, chunk)],
                         preferred_element_type=jnp.float32)     # (bt, chunk)
            o_ref[:, pl.ds(j, chunk)] = x_ref[:, pl.ds(j, chunk)] * sc
            return carry
        jax.lax.fori_loop(0, num_chunks, body, 0, unroll=True)


def _se_kernel_reduce(x_ref, w1_ref, b1_ref, w2_ref, b2_ref, o_ref, *, inv_t):
    """Large-C path. x_ref/o_ref: (bt, T, C); lane dim = C (lane-dense),
    squeeze = sublane-axis sum, re-broadcast = sublane broadcast."""
    y = jnp.sum(x_ref[...], axis=1) * inv_t                            # (bt, C)
    h = jnp.dot(y, w1_ref[...], preferred_element_type=jnp.float32) + b1_ref[...]
    h = jnp.maximum(h, 0.0)
    s = jnp.dot(h, w2_ref[...], preferred_element_type=jnp.float32) + b2_ref[...]
    s = jax.nn.sigmoid(s)                                              # (bt, C)
    o_ref[...] = x_ref[...] * s[:, None, :]


# --------------------------------------------------------------------------
# Heuristics / constants
# --------------------------------------------------------------------------
def _round_up(x, m):
    return ((x + m - 1) // m) * m


def _vmem_capacity_bytes():
    try:
        cap = int(pltpu.get_tpu_info().vmem_capacity_bytes)
        if cap > 0:
            return cap
    except Exception:
        pass
    return 64 << 20  # conservative default: v7x-sized VMEM per TensorCore


def _choose_batch_tile(batch, row_bytes, block_budget_bytes):
    """Pick a batch tile (multiple of 8) and the padded batch it divides.
    x-in + x-out, each double-buffered by the pipeline => 4x block bytes."""
    bt_cap = max(8, ((block_budget_bytes // (4 * row_bytes)) // 8) * 8)
    total_bytes = batch * row_bytes
    if batch <= bt_cap and total_bytes <= (2 << 20):
        # Tiny problem: one full-batch block; extra grid steps would be pure
        # per-step overhead (~0.35 us each) on single-TC v5e/v6e.
        bt = _round_up(batch, 8)
    else:
        # Target >= 4 grid steps so dual-TC chips (v7x) get >= 2 steps per
        # core and input/output double-buffering actually hides the HBM stream.
        bt = min(bt_cap, max(8, _round_up(pl.cdiv(batch, 4), 8)))
    # TODO(synk): if a single row (row_bytes) is itself too big for VMEM, an
    # extra grid axis over T / the lane dim would be needed; not handled here.
    return bt, _round_up(batch, bt)


def _pick_lane_chunk(ct_pad, max_chunk=2048):
    if ct_pad <= max_chunk:
        return ct_pad
    for c in range(max_chunk, 127, -128):
        if ct_pad % c == 0:
            return c
    return 128


def _use_matmul_formulation(C, T):
    # Matmul-expressed squeeze/broadcast only pays when C is small (lane
    # density requires flattening) and the O(C^2*T) constants stay tiny.
    const_bytes = 2 * C * C * T * 4
    return C < 128 and const_bytes <= (8 << 20)


@functools.lru_cache(maxsize=None)
def _pool_expand_np(C, T, CT_pad):
    """Host-side constant pool / expand matrices (built once, cached)."""
    expand = np.repeat(np.eye(C, dtype=np.float32), T, axis=1)         # (C, C*T)
    pool = expand.T * np.float32(1.0 / T)                              # (C*T, C)
    if CT_pad > C * T:
        pad = CT_pad - C * T
        expand = np.pad(expand, ((0, 0), (0, pad)))
        pool = np.pad(pool, ((0, pad), (0, 0)))
    return pool, expand


# --------------------------------------------------------------------------
# Paths
# --------------------------------------------------------------------------
def _se_matmul_path(x, w1t, b1r, w2t, b2r, block_budget, vmem_limit):
    B, C, T = x.shape
    H = w1t.shape[1]
    CT = C * T
    CT_pad = _round_up(CT, 128)          # keep unmasked lane-dense vst stores

    x_flat = jnp.asarray(x, jnp.float32).reshape(B, CT)
    if CT_pad != CT:
        x_flat = jnp.pad(x_flat, ((0, 0), (0, CT_pad - CT)))

    bt, B_pad = _choose_batch_tile(B, CT_pad * 4, block_budget)
    if B_pad != B:
        x_flat = jnp.pad(x_flat, ((0, B_pad - B), (0, 0)))

    pool_np, exp_np = _pool_expand_np(C, T, CT_pad)
    pool = jnp.asarray(pool_np)
    expand = jnp.asarray(exp_np)

    chunk = _pick_lane_chunk(CT_pad)
    num_chunks = CT_pad // chunk
    kernel = functools.partial(_se_kernel_matmul, chunk=chunk,
                               num_chunks=num_chunks)

    def call(single_buffer):
        res_kw = dict(pipeline_mode=pl.Buffered(1)) if single_buffer else {}
        resident = lambda i: (0, 0)      # grid-invariant blocks
        grid_spec = pltpu.PrefetchScalarGridSpec(
            num_scalar_prefetch=0,
            grid=(B_pad // bt,),
            in_specs=[
                pl.BlockSpec((bt, CT_pad), lambda i: (i, 0)),   # x batch tile
                pl.BlockSpec((CT_pad, C), resident, **res_kw),  # pool
                pl.BlockSpec((C, CT_pad), resident, **res_kw),  # expand
                pl.BlockSpec((C, H), resident, **res_kw),       # w1^T
                pl.BlockSpec((1, H), resident, **res_kw),       # b1
                pl.BlockSpec((H, C), resident, **res_kw),       # w2^T
                pl.BlockSpec((1, C), resident, **res_kw),       # b2
            ],
            out_specs=pl.BlockSpec((bt, CT_pad), lambda i: (i, 0)),
        )
        return pl.pallas_call(
            kernel,
            out_shape=jax.ShapeDtypeStruct((B_pad, CT_pad), jnp.float32),
            grid_spec=grid_spec,
            compiler_params=pltpu.CompilerParams(
                dimension_semantics=("parallel",),
                vmem_limit_bytes=vmem_limit,
            ),
        )(x_flat, pool, expand, w1t, b1r, w2t, b2r)

    try:
        out_flat = call(True)
    except Exception:
        # pl.Buffered(1) single-buffering not supported on this jax version.
        out_flat = call(False)

    return out_flat[:B, :CT].reshape(B, C, T)


def _se_reduce_path(x, w1t, b1r, w2t, b2r, block_budget, vmem_limit):
    B, C, T = x.shape
    H = w1t.shape[1]

    # (B, T, C): lane dim = C (>=128 here), squeeze = sublane sum, broadcast
    # back = sublane broadcast.  No O(C^2*T) constants / extra MXU work.
    # TODO(synk): the wrapper transposes cost one extra HBM pass each way; a
    # fully fused variant would stream (bt, C, T) blocks and relayout in-kernel.
    x_t = jnp.transpose(jnp.asarray(x, jnp.float32), (0, 2, 1))        # (B,T,C)

    bt, B_pad = _choose_batch_tile(B, T * C * 4, block_budget)
    if B_pad != B:
        x_t = jnp.pad(x_t, ((0, B_pad - B), (0, 0), (0, 0)))

    kernel = functools.partial(_se_kernel_reduce, inv_t=float(1.0 / T))

    def call(single_buffer):
        res_kw = dict(pipeline_mode=pl.Buffered(1)) if single_buffer else {}
        resident = lambda i: (0, 0)
        grid_spec = pltpu.PrefetchScalarGridSpec(
            num_scalar_prefetch=0,
            grid=(B_pad // bt,),
            in_specs=[
                pl.BlockSpec((bt, T, C), lambda i: (i, 0, 0)),  # x batch tile
                pl.BlockSpec((C, H), resident, **res_kw),       # w1^T
                pl.BlockSpec((1, H), resident, **res_kw),       # b1
                pl.BlockSpec((H, C), resident, **res_kw),       # w2^T
                pl.BlockSpec((1, C), resident, **res_kw),       # b2
            ],
            out_specs=pl.BlockSpec((bt, T, C), lambda i: (i, 0, 0)),
        )
        return pl.pallas_call(
            kernel,
            out_shape=jax.ShapeDtypeStruct((B_pad, T, C), jnp.float32),
            grid_spec=grid_spec,
            compiler_params=pltpu.CompilerParams(
                dimension_semantics=("parallel",),
                vmem_limit_bytes=vmem_limit,
            ),
        )(x_t, w1t, b1r, w2t, b2r)

    try:
        out_t = call(True)
    except Exception:
        out_t = call(False)

    return jnp.transpose(out_t[:B], (0, 2, 1))


# --------------------------------------------------------------------------
# Public wrapper
# --------------------------------------------------------------------------
def se_module(x, w1, b1, w2, b2):
    """Fused SEModule forward.
    x: (B, C, T) float32.  w1: (H, C), b1: (H,), w2: (C, H), b2: (C,)
    (PyTorch nn.Linear layout).  Returns (B, C, T)."""
    B, C, T = x.shape
    H = w1.shape[0]

    # Generation-aware VMEM budgets: generous on 128 MiB v5e/v6e, tight on
    # 64 MiB v7x, with headroom for compiler scratch + in-kernel temporaries.
    vmem_cap = _vmem_capacity_bytes()
    vmem_limit = min(96 << 20, (vmem_cap * 5) // 8)   # 80 MiB / 40 MiB
    block_budget = (vmem_limit * 3) // 5              # for the 4x x-in/x-out blocks

    # PyTorch Linear is y @ W.T + b -> pre-transpose once in the wrapper
    # (constant-folded / fused when the caller jits this function).
    w1t = jnp.asarray(w1, jnp.float32).T              # (C, H)
    w2t = jnp.asarray(w2, jnp.float32).T              # (H, C)
    b1r = jnp.asarray(b1, jnp.float32).reshape(1, H)
    b2r = jnp.asarray(b2, jnp.float32).reshape(1, C)

    if _use_matmul_formulation(C, T):
        return _se_matmul_path(x, w1t, b1r, w2t, b2r, block_budget, vmem_limit)
    return _se_reduce_path(x, w1t, b1r, w2t, b2r, block_budget, vmem_limit)


def se_reference(x, w1, b1, w2, b2):
    y = jnp.mean(x, axis=-1)                           # (B, C)
    y = jnp.maximum(y @ w1.T + b1, 0.0)                # (B, H)
    y = jax.nn.sigmoid(y @ w2.T + b2)                  # (B, C)
    return x * y[:, :, None]


if __name__ == "__main__":
    B, C, T = 16, 64, 16
    reduction = 16
    H = C // reduction                                 # 4

    key = jax.random.PRNGKey(0)
    kx, k1, k2, k3, k4 = jax.random.split(key, 5)

    x = jax.random.normal(kx, (B, C, T), dtype=jnp.float32)
    w1 = jax.random.uniform(k1, (H, C), minval=-1.0, maxval=1.0) / jnp.sqrt(C)
    b1 = jax.random.uniform(k2, (H,), minval=-1.0, maxval=1.0) / jnp.sqrt(C)
    w2 = jax.random.uniform(k3, (C, H), minval=-1.0, maxval=1.0) / jnp.sqrt(H)
    b2 = jax.random.uniform(k4, (C,), minval=-1.0, maxval=1.0) / jnp.sqrt(H)

    out = se_module(x, w1, b1, w2, b2)
    out = jax.block_until_ready(out)

    ref = se_reference(x, w1, b1, w2, b2)
    assert out.shape == (B, C, T)
    assert jnp.allclose(out, ref, atol=1e-5, rtol=1e-5), "mismatch vs reference"
    print("KERNEL_OK")
</pallas_src>

<mosaic_0001>
module attributes {stable_mosaic.version = 11 : i64} {
  func.func @_se_kernel_matmul(%arg0: i32, %arg1: memref<16x1024xf32, #tpu.memory_space<vmem>>, %arg2: memref<1024x64xf32, #tpu.memory_space<vmem>>, %arg3: memref<64x1024xf32, #tpu.memory_space<vmem>>, %arg4: memref<64x4xf32, #tpu.memory_space<vmem>>, %arg5: memref<1x4xf32, #tpu.memory_space<vmem>>, %arg6: memref<4x64xf32, #tpu.memory_space<vmem>>, %arg7: memref<1x64xf32, #tpu.memory_space<vmem>>, %arg8: memref<16x1024xf32, #tpu.memory_space<vmem>>) attributes {dimension_semantics = [#tpu.dimension_semantics<parallel>], iteration_bounds = array<i64: 1>, scalar_prefetch = 0 : i64, scratch_operands = 0 : i64, tpu.core_type = #tpu.core_type<tc>, window_params = [{transform_indices = @transform_0, window_bounds = array<i64: 16, 1024>}, {pipeline_mode = #tpu.pipeline_mode<synchronous>, transform_indices = @transform_1, window_bounds = array<i64: 1024, 64>}, {pipeline_mode = #tpu.pipeline_mode<synchronous>, transform_indices = @transform_2, window_bounds = array<i64: 64, 1024>}, {pipeline_mode = #tpu.pipeline_mode<synchronous>, transform_indices = @transform_3, window_bounds = array<i64: 64, 4>}, {pipeline_mode = #tpu.pipeline_mode<synchronous>, transform_indices = @transform_4, window_bounds = array<i64: 1, 4>}, {pipeline_mode = #tpu.pipeline_mode<synchronous>, transform_indices = @transform_5, window_bounds = array<i64: 4, 64>}, {pipeline_mode = #tpu.pipeline_mode<synchronous>, transform_indices = @transform_6, window_bounds = array<i64: 1, 64>}, {transform_indices = @transform_7, window_bounds = array<i64: 16, 1024>}]} {
    %c0 = arith.constant 0 : index
    %c0_0 = arith.constant 0 : index
    %0 = vector.load %arg1[%c0, %c0_0] : memref<16x1024xf32, #tpu.memory_space<vmem>>, vector<16x1024xf32>
    %c0_1 = arith.constant 0 : index
    %c0_2 = arith.constant 0 : index
    %1 = vector.load %arg2[%c0_1, %c0_2] : memref<1024x64xf32, #tpu.memory_space<vmem>>, vector<1024x64xf32>
    %cst = arith.constant dense<0.000000e+00> : vector<16x64xf32>
    %2 = tpu.matmul %0, %1, %cst {dimension_numbers = #tpu.dot_dimension_numbers<[1], [0], [0], [1], [0, 0, 1, 1], [], []>} : vector<16x1024xf32>, vector<1024x64xf32>, vector<16x64xf32> -> vector<16x64xf32>
    %c0_3 = arith.constant 0 : index
    %c0_4 = arith.constant 0 : index
    %3 = vector.load %arg4[%c0_3, %c0_4] : memref<64x4xf32, #tpu.memory_space<vmem>>, vector<64x4xf32>
    %cst_5 = arith.constant dense<0.000000e+00> : vector<16x4xf32>
    %4 = tpu.matmul %2, %3, %cst_5 {dimension_numbers = #tpu.dot_dimension_numbers<[1], [0], [0], [1], [0, 0, 1, 1], [], []>} : vector<16x64xf32>, vector<64x4xf32>, vector<16x4xf32> -> vector<16x4xf32>
    %c0_6 = arith.constant 0 : index
    %c0_7 = arith.constant 0 : index
    %5 = vector.load %arg5[%c0_6, %c0_7] : memref<1x4xf32, #tpu.memory_space<vmem>>, vector<1x4xf32>
    %6 = vector.broadcast %5 : vector<1x4xf32> to vector<16x4xf32>
    %7 = arith.addf %4, %6 : vector<16x4xf32>
    %cst_8 = arith.constant 0.000000e+00 : f32
    %8 = vector.broadcast %cst_8 : f32 to vector<16x4xf32>
    %9 = arith.maximumf %7, %8 : vector<16x4xf32>
    %c0_9 = arith.constant 0 : index
    %c0_10 = arith.constant 0 : index
    %10 = vector.load %arg6[%c0_9, %c0_10] : memref<4x64xf32, #tpu.memory_space<vmem>>, vector<4x64xf32>
    %cst_11 = arith.constant dense<0.000000e+00> : vector<16x64xf32>
    %11 = tpu.matmul %9, %10, %cst_11 {dimension_numbers = #tpu.dot_dimension_numbers<[1], [0], [0], [1], [0, 0, 1, 1], [], []>} : vector<16x4xf32>, vector<4x64xf32>, vector<16x64xf32> -> vector<16x64xf32>
    %c0_12 = arith.constant 0 : index
    %c0_13 = arith.constant 0 : index
    %12 = vector.load %arg7[%c0_12, %c0_13] : memref<1x64xf32, #tpu.memory_space<vmem>>, vector<1x64xf32>
    %13 = vector.broadcast %12 : vector<1x64xf32> to vector<16x64xf32>
    %14 = arith.addf %11, %13 : vector<16x64xf32>
    %15 = arith.negf %14 : vector<16x64xf32>
    %16 = math.exp %15 : vector<16x64xf32>
    %cst_14 = arith.constant 1.000000e+00 : f32
    %17 = vector.broadcast %cst_14 : f32 to vector<16x64xf32>
    %18 = arith.addf %17, %16 : vector<16x64xf32>
    %19 = arith.divf %17, %18 : vector<16x64xf32>
    %c0_15 = arith.constant 0 : index
    %c0_16 = arith.constant 0 : index
    %20 = vector.load %arg3[%c0_15, %c0_16] : memref<64x1024xf32, #tpu.memory_space<vmem>>, vector<64x1024xf32>
    %cst_17 = arith.constant dense<0.000000e+00> : vector<16x1024xf32>
    %21 = tpu.matmul %19, %20, %cst_17 {dimension_numbers = #tpu.dot_dimension_numbers<[1], [0], [0], [1], [0, 0, 1, 1], [], []>} : vector<16x64xf32>, vector<64x1024xf32>, vector<16x1024xf32> -> vector<16x1024xf32>
    %c0_18 = arith.constant 0 : index
    %c0_19 = arith.constant 0 : index
    %22 = vector.load %arg1[%c0_18, %c0_19] : memref<16x1024xf32, #tpu.memory_space<vmem>>, vector<16x1024xf32>
    %23 = arith.mulf %22, %21 : vector<16x1024xf32>
    %c0_20 = arith.constant 0 : index
    %c0_21 = arith.constant 0 : index
    %24 = vector.load %arg8[%c0_20, %c0_21] : memref<16x1024xf32, #tpu.memory_space<vmem>>, vector<16x1024xf32>
    tpu.vector_store %arg8[%c0_20, %c0_21], %23 {strides = array<i32>} : memref<16x1024xf32, #tpu.memory_space<vmem>>, vector<16x1024xf32>,
    return
  }
  func.func @transform_0(%arg0: i32) -> (i32, i32) {
    %c0_i32 = arith.constant 0 : i32
    %c0_i32_0 = arith.constant 0 : i32
    return %arg0, %c0_i32 : i32, i32
  }
  func.func @transform_1(%arg0: i32) -> (i32, i32) {
    %c0_i32 = arith.constant 0 : i32
    %c0_i32_0 = arith.constant 0 : i32
    %c0_i32_1 = arith.constant 0 : i32
    return %c0_i32, %c0_i32_0 : i32, i32
  }
  func.func @transform_2(%arg0: i32) -> (i32, i32) {
    %c0_i32 = arith.constant 0 : i32
    %c0_i32_0 = arith.constant 0 : i32
    %c0_i32_1 = arith.constant 0 : i32
    return %c0_i32, %c0_i32_0 : i32, i32
  }
  func.func @transform_3(%arg0: i32) -> (i32, i32) {
    %c0_i32 = arith.constant 0 : i32
    %c0_i32_0 = arith.constant 0 : i32
    %c0_i32_1 = arith.constant 0 : i32
    return %c0_i32, %c0_i32_0 : i32, i32
  }
  func.func @transform_4(%arg0: i32) -> (i32, i32) {
    %c0_i32 = arith.constant 0 : i32
    %c0_i32_0 = arith.constant 0 : i32
    %c0_i32_1 = arith.constant 0 : i32
    return %c0_i32, %c0_i32_0 : i32, i32
  }
  func.func @transform_5(%arg0: i32) -> (i32, i32) {
    %c0_i32 = arith.constant 0 : i32
    %c0_i32_0 = arith.constant 0 : i32
    %c0_i32_1 = arith.constant 0 : i32
    return %c0_i32, %c0_i32_0 : i32, i32
  }
  func.func @transform_6(%arg0: i32) -> (i32, i32) {
    %c0_i32 = arith.constant 0 : i32
    %c0_i32_0 = arith.constant 0 : i32
    %c0_i32_1 = arith.constant 0 : i32
    return %c0_i32, %c0_i32_0 : i32, i32
  }
  func.func @transform_7(%arg0: i32) -> (i32, i32) {
    %c0_i32 = arith.constant 0 : i32
    %c0_i32_0 = arith.constant 0 : i32
    return %arg0, %c0_i32 : i32, i32
  }
}

module attributes {stable_mosaic.version = 11 : i64} {
  func.func @_se_kernel_matmul(%arg0: i32, %arg1: memref<16x1024xf32, #tpu.memory_space<vmem>>, %arg2: memref<1024x64xf32, #tpu.memory_space<vmem>>, %arg3: memref<64x1024xf32, #tpu.memory_space<vmem>>, %arg4: memref<64x4xf32, #tpu.memory_space<vmem>>, %arg5: memref<1x4xf32, #tpu.memory_space<vmem>>, %arg6: memref<4x64xf32, #tpu.memory_space<vmem>>, %arg7: memref<1x64xf32, #tpu.memory_space<vmem>>, %arg8: memref<16x1024xf32, #tpu.memory_space<vmem>>) attributes {dimension_semantics = [#tpu.dimension_semantics<parallel>], iteration_bounds = array<i64: 1>, scalar_prefetch = 0 : i64, scratch_operands = 0 : i64, tpu.core_type = #tpu.core_type<tc>, window_params = [{transform_indices = @transform_0, window_bounds = array<i64: 16, 1024>}, {pipeline_mode = #tpu.pipeline_mode<synchronous>, transform_indices = @transform_1, window_bounds = array<i64: 1024, 64>}, {pipeline_mode = #tpu.pipeline_mode<synchronous>, transform_indices = @transform_2, window_bounds = array<i64: 64, 1024>}, {pipeline_mode = #tpu.pipeline_mode<synchronous>, transform_indices = @transform_3, window_bounds = array<i64: 64, 4>}, {pipeline_mode = #tpu.pipeline_mode<synchronous>, transform_indices = @transform_4, window_bounds = array<i64: 1, 4>}, {pipeline_mode = #tpu.pipeline_mode<synchronous>, transform_indices = @transform_5, window_bounds = array<i64: 4, 64>}, {pipeline_mode = #tpu.pipeline_mode<synchronous>, transform_indices = @transform_6, window_bounds = array<i64: 1, 64>}, {transform_indices = @transform_7, window_bounds = array<i64: 16, 1024>}]} {
    %c0 = arith.constant 0 : index
    %c0_0 = arith.constant 0 : index
    %0 = vector.load %arg1[%c0, %c0_0] : memref<16x1024xf32, #tpu.memory_space<vmem>>, vector<16x1024xf32>
    %c0_1 = arith.constant 0 : index
    %c0_2 = arith.constant 0 : index
    %1 = vector.load %arg2[%c0_1, %c0_2] : memref<1024x64xf32, #tpu.memory_space<vmem>>, vector<1024x64xf32>
    %cst = arith.constant dense<0.000000e+00> : vector<16x64xf32>
    %2 = tpu.matmul %0, %1, %cst {dimension_numbers = #tpu.dot_dimension_numbers<[1], [0], [0], [1], [0, 0, 1, 1], [], []>} : vector<16x1024xf32>, vector<1024x64xf32>, vector<16x64xf32> -> vector<16x64xf32>
    %c0_3 = arith.constant 0 : index
    %c0_4 = arith.constant 0 : index
    %3 = vector.load %arg4[%c0_3, %c0_4] : memref<64x4xf32, #tpu.memory_space<vmem>>, vector<64x4xf32>
    %cst_5 = arith.constant dense<0.000000e+00> : vector<16x4xf32>
    %4 = tpu.matmul %2, %3, %cst_5 {dimension_numbers = #tpu.dot_dimension_numbers<[1], [0], [0], [1], [0, 0, 1, 1], [], []>} : vector<16x64xf32>, vector<64x4xf32>, vector<16x4xf32> -> vector<16x4xf32>
    %c0_6 = arith.constant 0 : index
    %c0_7 = arith.constant 0 : index
    %5 = vector.load %arg5[%c0_6, %c0_7] : memref<1x4xf32, #tpu.memory_space<vmem>>, vector<1x4xf32>
    %6 = vector.broadcast %5 : vector<1x4xf32> to vector<16x4xf32>
    %7 = arith.addf %4, %6 : vector<16x4xf32>
    %cst_8 = arith.constant 0.000000e+00 : f32
    %8 = vector.broadcast %cst_8 : f32 to vector<16x4xf32>
    %9 = arith.maximumf %7, %8 : vector<16x4xf32>
    %c0_9 = arith.constant 0 : index
    %c0_10 = arith.constant 0 : index
    %10 = vector.load %arg6[%c0_9, %c0_10] : memref<4x64xf32, #tpu.memory_space<vmem>>, vector<4x64xf32>
    %cst_11 = arith.constant dense<0.000000e+00> : vector<16x64xf32>
    %11 = tpu.matmul %9, %10, %cst_11 {dimension_numbers = #tpu.dot_dimension_numbers<[1], [0], [0], [1], [0, 0, 1, 1], [], []>} : vector<16x4xf32>, vector<4x64xf32>, vector<16x64xf32> -> vector<16x64xf32>
    %c0_12 = arith.constant 0 : index
    %c0_13 = arith.constant 0 : index
    %12 = vector.load %arg7[%c0_12, %c0_13] : memref<1x64xf32, #tpu.memory_space<vmem>>, vector<1x64xf32>
    %13 = vector.broadcast %12 : vector<1x64xf32> to vector<16x64xf32>
    %14 = arith.addf %11, %13 : vector<16x64xf32>
    %15 = arith.negf %14 : vector<16x64xf32>
    %16 = math.exp %15 : vector<16x64xf32>
    %cst_14 = arith.constant 1.000000e+00 : f32
    %17 = vector.broadcast %cst_14 : f32 to vector<16x64xf32>
    %18 = arith.addf %17, %16 : vector<16x64xf32>
    %19 = arith.divf %17, %18 : vector<16x64xf32>
    %c0_15 = arith.constant 0 : index
    %c0_16 = arith.constant 0 : index
    %20 = vector.load %arg3[%c0_15, %c0_16] : memref<64x1024xf32, #tpu.memory_space<vmem>>, vector<64x1024xf32>
    %cst_17 = arith.constant dense<0.000000e+00> : vector<16x1024xf32>
    %21 = tpu.matmul %19, %20, %cst_17 {dimension_numbers = #tpu.dot_dimension_numbers<[1], [0], [0], [1], [0, 0, 1, 1], [], []>} : vector<16x64xf32>, vector<64x1024xf32>, vector<16x1024xf32> -> vector<16x1024xf32>
    %c0_18 = arith.constant 0 : index
    %c0_19 = arith.constant 0 : index
    %22 = vector.load %arg1[%c0_18, %c0_19] : memref<16x1024xf32, #tpu.memory_space<vmem>>, vector<16x1024xf32>
    %23 = arith.mulf %22, %21 : vector<16x1024xf32>
    %c0_20 = arith.constant 0 : index
    %c0_21 = arith.constant 0 : index
    %24 = vector.load %arg8[%c0_20, %c0_21] : memref<16x1024xf32, #tpu.memory_space<vmem>>, vector<16x1024xf32>
    tpu.vector_store %arg8[%c0_20, %c0_21], %23 {strides = array<i32>} : memref<16x1024xf32, #tpu.memory_space<vmem>>, vector<16x1024xf32>,
    return
  }
  func.func @transform_0(%arg0: i32) -> (i32, i32) {
    %c0_i32 = arith.constant 0 : i32
    %c0_i32_0 = arith.constant 0 : i32
    return %arg0, %c0_i32 : i32, i32
  }
  func.func @transform_1(%arg0: i32) -> (i32, i32) {
    %c0_i32 = arith.constant 0 : i32
    %c0_i32_0 = arith.constant 0 : i32
    %c0_i32_1 = arith.constant 0 : i32
    return %c0_i32, %c0_i32_0 : i32, i32
  }
  func.func @transform_2(%arg0: i32) -> (i32, i32) {
    %c0_i32 = arith.constant 0 : i32
    %c0_i32_0 = arith.constant 0 : i32
    %c0_i32_1 = arith.constant 0 : i32
    return %c0_i32, %c0_i32_0 : i32, i32
  }
  func.func @transform_3(%arg0: i32) -> (i32, i32) {
    %c0_i32 = arith.constant 0 : i32
    %c0_i32_0 = arith.constant 0 : i32
    %c0_i32_1 = arith.constant 0 : i32
    return %c0_i32, %c0_i32_0 : i32, i32
  }
  func.func @transform_4(%arg0: i32) -> (i32, i32) {
    %c0_i32 = arith.constant 0 : i32
    %c0_i32_0 = arith.constant 0 : i32
    %c0_i32_1 = arith.constant 0 : i32
    return %c0_i32, %c0_i32_0 : i32, i32
  }
  func.func @transform_5(%arg0: i32) -> (i32, i32) {
    %c0_i32 = arith.constant 0 : i32
    %c0_i32_0 = arith.constant 0 : i32
    %c0_i32_1 = arith.constant 0 : i32
    return %c0_i32, %c0_i32_0 : i32, i32
  }
  func.func @transform_6(%arg0: i32) -> (i32, i32) {
    %c0_i32 = arith.constant 0 : i32
    %c0_i32_0 = arith.constant 0 : i32
    %c0_i32_1 = arith.constant 0 : i32
    return %c0_i32, %c0_i32_0 : i32, i32
  }
  func.func @transform_7(%arg0: i32) -> (i32, i32) {
    %c0_i32 = arith.constant 0 : i32
    %c0_i32_0 = arith.constant 0 : i32
    return %arg0, %c0_i32 : i32, i32
  }
}

</mosaic_0001>

<bundles_post_ra>
// kernel: tpu_custom_call.1
= control target key start
LH: loop header
LB: loop body
LE: loop exit
PB: predicated region body
PF: predicated region fallthrough
CT: control target
= control target key end

     0   :  { %s2347_s0 = inlined_call_operand.vmem [shape: f32[16,1024], index: 0, kind: input, shape index: {}]   ;;  %s2348_s1 = inlined_call_operand.vmem [shape: f32[1024,64], index: 1, kind: input, shape index: {}]   ;;  %s2349_s2 = inlined_call_operand.vmem [shape: f32[64,1024], index: 2, kind: input, shape index: {}]   ;;  %s2350_s3 = inlined_call_operand.vmem [shape: f32[64,4], index: 3, kind: input, shape index: {}]   ;;  %s2351_s4 = inlined_call_operand.vmem [shape: f32[1,4], index: 4, kind: input, shape index: {}]   ;;  %s2352_s5 = inlined_call_operand.vmem [shape: f32[4,64], index: 5, kind: input, shape index: {}]   ;;  %s2353_s6 = inlined_call_operand.vmem [shape: f32[1,64], index: 6, kind: input, shape index: {}]   ;;  %s2354_s7 = inlined_call_operand.hbm [shape: f32[16,1024], index: 7, kind: output, shape index: {}]  }
   0x1   :  { %v59_v0 = vld [vmem:[%s2348_s1 + $0x80] sm:$0xff]  ;;  %v60_v1 = vld [vmem:[%s2348_s1 + $0x88] sm:$0xff]  ;;  %v61_v11 = vld [vmem:[%s2348_s1 + $0x90] sm:$0xff] }
   0x2   :  { %v91_v2 = vld [vmem:[%s2348_s1 + $0x180] sm:$0xff]  ;;  %v1308_v3 = vpack.c.bf16 %v60_v1, %v59_v0  ;;  %v92_v4 = vld [vmem:[%s2348_s1 + $0x188] sm:$0xff]  ;;  %v62_v13 = vld [vmem:[%s2348_s1 + $0x98] sm:$0xff] }
   0x3   :  { %v43_v5 = vld [vmem:[%s2348_s1] sm:$0xff]  ;;  %v44_v6 = vld [vmem:[%s2348_s1 + $0x8] sm:$0xff]  ;;  %v1340_v7 = vpack.c.bf16 %v92_v4, %v91_v2  ;;  %v93_v14 = vld [vmem:[%s2348_s1 + $0x190] sm:$0xff]  ;;  %v1312_v16 = vpack.c.bf16 %v62_v13, %v61_v11 }
   0x4   :  { %v1310_v8 = vpack.c.bf16 %v44_v6, %v43_v5  ;;  %v75_v9 = vld [vmem:[%s2348_s1 + $0x100] sm:$0xff]  ;;  %v76_v10 = vld [vmem:[%s2348_s1 + $0x108] sm:$0xff]  ;;  %1309 = vmatprep.subr.bf16.mxu0 %v1308_v3  ;;  %v94_v15 = vld [vmem:[%s2348_s1 + $0x198] sm:$0xff] }
   0x5   :  { %v1342_v12 = vpack.c.bf16 %v76_v10, %v75_v9  ;;  %1341 = vmatprep.subr.bf16.mxu1 %v1340_v7  ;;  %v1344_v17 = vpack.c.bf16 %v94_v15, %v93_v14  ;;  %v45_v18 = vld [vmem:[%s2348_s1 + $0x10] sm:$0xff]  ;;  %v46_v19 = vld [vmem:[%s2348_s1 + $0x18] sm:$0xff]  ;;  %v63_v23 = vld [vmem:[%s2348_s1 + $0xa0] sm:$0xff] }
   0x6   :  { %1311 = vmatpush3.bf16.msra.mxu0 %v1310_v8  ;;  %v77_v20 = vld [vmem:[%s2348_s1 + $0x110] sm:$0xff]  ;;  %v1314_v21 = vpack.c.bf16 %v46_v19, %v45_v18  ;;  %v78_v22 = vld [vmem:[%s2348_s1 + $0x118] sm:$0xff]  ;;  %v64_v24 = vld [vmem:[%s2348_s1 + $0xa8] sm:$0xff] }
   0x7   :  { %1343 = vmatpush3.bf16.msra.mxu1 %v1342_v12  ;;  %1313 = vmatprep.subr.bf16.mxu0 %v1312_v16  ;;  %v1346_v25 = vpack.c.bf16 %v78_v22, %v77_v20  ;;  %v1316_v26 = vpack.c.bf16 %v64_v24, %v63_v23  ;;  %v95_v27 = vld [vmem:[%s2348_s1 + $0x1a0] sm:$0xff]  ;;  %v96_v28 = vld [vmem:[%s2348_s1 + $0x1a8] sm:$0xff]  ;;  %v65_v35 = vld [vmem:[%s2348_s1 + $0xb0] sm:$0xff] }
   0x8   :  { %1345 = vmatprep.subr.bf16.mxu1 %v1344_v17  ;;  %v47_v29 = vld [vmem:[%s2348_s1 + $0x20] sm:$0xff]  ;;  %v1348_v30 = vpack.c.bf16 %v96_v28, %v95_v27  ;;  %v48_v31 = vld [vmem:[%s2348_s1 + $0x28] sm:$0xff]  ;;  %v66_v36 = vld [vmem:[%s2348_s1 + $0xb8] sm:$0xff] }
   0x9   :  { %v79_v32 = vld [vmem:[%s2348_s1 + $0x120] sm:$0xff]  ;;  %v80_v33 = vld [vmem:[%s2348_s1 + $0x128] sm:$0xff]  ;;  %v1318_v34 = vpack.c.bf16 %v48_v31, %v47_v29  ;;  %v97_v37 = vld [vmem:[%s2348_s1 + $0x1b0] sm:$0xff]  ;;  %v1320_v39 = vpack.c.bf16 %v66_v36, %v65_v35 }
   0xa   :  { %1315 = vmatpush3.bf16.msra.mxu0 %v1314_v21  ;;  %v1350_v38 = vpack.c.bf16 %v80_v33, %v79_v32  ;;  %v98_v40 = vld [vmem:[%s2348_s1 + $0x1b8] sm:$0xff]  ;;  %v49_v41 = vld [vmem:[%s2348_s1 + $0x30] sm:$0xff]  ;;  %v67_v46 = vld [vmem:[%s2348_s1 + $0xc0] sm:$0xff] }
   0xb   :  { %1347 = vmatpush3.bf16.msra.mxu1 %v1346_v25  ;;  %1317 = vmatprep.subr.bf16.mxu0 %v1316_v26  ;;  %v50_v42 = vld [vmem:[%s2348_s1 + $0x38] sm:$0xff]  ;;  %v1352_v43 = vpack.c.bf16 %v98_v40, %v97_v37  ;;  %v81_v44 = vld [vmem:[%s2348_s1 + $0x130] sm:$0xff]  ;;  %v68_v47 = vld [vmem:[%s2348_s1 + $0xc8] sm:$0xff] }
   0xc   :  { %1349 = vmatprep.subr.bf16.mxu1 %v1348_v30  ;;  %v82_v45 = vld [vmem:[%s2348_s1 + $0x138] sm:$0xff]  ;;  %v99_v48 = vld [vmem:[%s2348_s1 + $0x1c0] sm:$0xff]  ;;  %v100_v49 = vld [vmem:[%s2348_s1 + $0x1c8] sm:$0xff]  ;;  %v1322_v50 = vpack.c.bf16 %v50_v42, %v49_v41  ;;  %v1324_v52 = vpack.c.bf16 %v68_v47, %v67_v46 }
   0xd   :  { %v1354_v51 = vpack.c.bf16 %v82_v45, %v81_v44  ;;  %v51_v53 = vld [vmem:[%s2348_s1 + $0x40] sm:$0xff]  ;;  %v52_v54 = vld [vmem:[%s2348_s1 + $0x48] sm:$0xff]  ;;  %v1356_v56 = vpack.c.bf16 %v100_v49, %v99_v48  ;;  %v69_v58 = vld [vmem:[%s2348_s1 + $0xd0] sm:$0xff] }
   0xe   :  { %1319 = vmatpush3.bf16.msra.mxu0 %v1318_v34  ;;  %v83_v55 = vld [vmem:[%s2348_s1 + $0x140] sm:$0xff]  ;;  %v84_v57 = vld [vmem:[%s2348_s1 + $0x148] sm:$0xff]  ;;  %v70_v59 = vld [vmem:[%s2348_s1 + $0xd8] sm:$0xff]  ;;  %v1326_v62 = vpack.c.bf16 %v52_v54, %v51_v53 }
   0xf   :  { %1351 = vmatpush3.bf16.msra.mxu1 %v1350_v38  ;;  %1321 = vmatprep.subr.bf16.mxu0 %v1320_v39  ;;  %v101_v60 = vld [vmem:[%s2348_s1 + $0x1d0] sm:$0xff]  ;;  %v102_v61 = vld [vmem:[%s2348_s1 + $0x1d8] sm:$0xff]  ;;  %v1358_v63 = vpack.c.bf16 %v84_v57, %v83_v55  ;;  %v1328_v0 = vpack.c.bf16 %v70_v59, %v69_v58  ;;  %v71_v6 = vld [vmem:[%s2348_s1 + $0xe0] sm:$0xff] }
  0x10   :  { %1353 = vmatprep.subr.bf16.mxu1 %v1352_v43  ;;  %v53_v1 = vld [vmem:[%s2348_s1 + $0x50] sm:$0xff]  ;;  %v54_v2 = vld [vmem:[%s2348_s1 + $0x58] sm:$0xff]  ;;  %v1360_v4 = vpack.c.bf16 %v102_v61, %v101_v60  ;;  %v72_v7 = vld [vmem:[%s2348_s1 + $0xe8] sm:$0xff] }
  0x11   :  { %v85_v3 = vld [vmem:[%s2348_s1 + $0x150] sm:$0xff]  ;;  %v86_v5 = vld [vmem:[%s2348_s1 + $0x158] sm:$0xff]  ;;  %v103_v8 = vld [vmem:[%s2348_s1 + $0x1e0] sm:$0xff]  ;;  %v1330_v10 = vpack.c.bf16 %v54_v2, %v53_v1  ;;  %v1332_v14 = vpack.c.bf16 %v72_v7, %v71_v6 }
  0x12   :  { %1323 = vmatpush3.bf16.msra.mxu0 %v1322_v50  ;;  %v104_v9 = vld [vmem:[%s2348_s1 + $0x1e8] sm:$0xff]  ;;  %v55_v11 = vld [vmem:[%s2348_s1 + $0x60] sm:$0xff]  ;;  %v1362_v13 = vpack.c.bf16 %v86_v5, %v85_v3  ;;  %v1769_v17 = vld [vmem:[%s2347_s0 + $0x18] sm:$0xff] }
  0x13   :  { %1355 = vmatpush3.bf16.msra.mxu1 %v1354_v51  ;;  %1325 = vmatprep.subr.bf16.mxu0 %v1324_v52  ;;  %v56_v12 = vld [vmem:[%s2348_s1 + $0x68] sm:$0xff]  ;;  %v87_v15 = vld [vmem:[%s2348_s1 + $0x160] sm:$0xff]  ;;  %v1364_v18 = vpack.c.bf16 %v104_v9, %v103_v8  ;;  %v73_v20 = vld [vmem:[%s2348_s1 + $0xf0] sm:$0xff] }
  0x14   :  { %1357 = vmatprep.subr.bf16.mxu1 %v1356_v56  ;;  %v1764_v16 = vld [vmem:[%s2347_s0 + $0x8] sm:$0xff]  ;;  %v74_v21 = vld [vmem:[%s2348_s1 + $0xf8] sm:$0xff]  ;;  %v105_v22 = vld [vmem:[%s2348_s1 + $0x1f0] sm:$0xff]  ;;  %310 = vmatprep.mubr.f32.mxu1 %v1769_v17  ;;  %v1334_v24 = vpack.c.bf16 %v56_v12, %v55_v11 }
  0x15   :  { %v88_v19 = vld [vmem:[%s2348_s1 + $0x168] sm:$0xff]  ;;  %235 = vmatprep.mubr.f32.mxu0 %v1764_v16  ;;  %v106_v23 = vld [vmem:[%s2348_s1 + $0x1f8] sm:$0xff]  ;;  %v1336_v26 = vpack.c.bf16 %v74_v21, %v73_v20  ;;  %v57_v27 = vld [vmem:[%s2348_s1 + $0x70] sm:$0xff] }
  0x16   :  { %1327 = vmatpush3.bf16.msra.mxu0 %v1326_v62  ;;  %v1366_v25 = vpack.c.bf16 %v88_v19, %v87_v15  ;;  %v58_v28 = vld [vmem:[%s2348_s1 + $0x78] sm:$0xff]  ;;  %v89_v29 = vld [vmem:[%s2348_s1 + $0x170] sm:$0xff]  ;;  %v1368_v30 = vpack.c.bf16 %v106_v23, %v105_v22  ;;  %v123_v32 = vld [vmem:[%s2348_s1 + $0x280] sm:$0xff] }
  0x17   :  { %1359 = vmatpush3.bf16.msra.mxu1 %v1358_v63  ;;  %1329 = vmatprep.subr.bf16.mxu0 %v1328_v0  ;;  %v90_v31 = vld [vmem:[%s2348_s1 + $0x178] sm:$0xff]  ;;  %v124_v33 = vld [vmem:[%s2348_s1 + $0x288] sm:$0xff]  ;;  %v155_v34 = vld [vmem:[%s2348_s1 + $0x380] sm:$0xff]  ;;  %v1338_v36 = vpack.c.bf16 %v58_v28, %v57_v27 }
  0x18   :  { %1361 = vmatprep.subr.bf16.mxu1 %v1360_v4  ;;  %v156_v35 = vld [vmem:[%s2348_s1 + $0x388] sm:$0xff]  ;;  %v1370_v37 = vpack.c.bf16 %v90_v31, %v89_v29  ;;  %v1372_v38 = vpack.c.bf16 %v124_v33, %v123_v32  ;;  %v107_v39 = vld [vmem:[%s2348_s1 + $0x200] sm:$0xff]  ;;  %v125_v44 = vld [vmem:[%s2348_s1 + $0x290] sm:$0xff] }
  0x19   :  { %v108_v40 = vld [vmem:[%s2348_s1 + $0x208] sm:$0xff]  ;;  %v139_v41 = vld [vmem:[%s2348_s1 + $0x300] sm:$0xff]  ;;  %v1404_v42 = vpack.c.bf16 %v156_v35, %v155_v34  ;;  %v126_v45 = vld [vmem:[%s2348_s1 + $0x298] sm:$0xff] }
  0x1a   :  { %1331 = vmatpush3.bf16.msra.mxu0 %v1330_v10  ;;  %v140_v43 = vld [vmem:[%s2348_s1 + $0x308] sm:$0xff]  ;;  %v157_v46 = vld [vmem:[%s2348_s1 + $0x390] sm:$0xff]  ;;  %v158_v47 = vld [vmem:[%s2348_s1 + $0x398] sm:$0xff]  ;;  %v1374_v50 = vpack.c.bf16 %v108_v40, %v107_v39  ;;  %v1376_v52 = vpack.c.bf16 %v126_v45, %v125_v44 }
  0x1b   :  { %1363 = vmatpush3.bf16.msra.mxu1 %v1362_v13  ;;  %1333 = vmatprep.subr.bf16.mxu0 %v1332_v14  ;;  %v1839_v48 = vld [vmem:[%s2347_s0] sm:$0xff]  ;;  %v1844_v49 = vld [vmem:[%s2347_s0 + $0x10] sm:$0xff]  ;;  %v1406_v51 = vpack.c.bf16 %v140_v43, %v139_v41  ;;  %v110_v54 = vld [vmem:[%s2348_s1 + $0x218] sm:$0xff]  ;;  %v1408_v56 = vpack.c.bf16 %v158_v47, %v157_v46 }
  0x1c   :  { %1365 = vmatprep.subr.bf16.mxu1 %v1364_v18  ;;  %v109_v53 = vld [vmem:[%s2348_s1 + $0x210] sm:$0xff]  ;;  %v142_v57 = vld [vmem:[%s2348_s1 + $0x318] sm:$0xff]  ;;  %v127_v58 = vld [vmem:[%s2348_s1 + $0x2a0] sm:$0xff] }
  0x1d   :  { %v141_v55 = vld [vmem:[%s2348_s1 + $0x310] sm:$0xff]  ;;  %v128_v59 = vld [vmem:[%s2348_s1 + $0x2a8] sm:$0xff]  ;;  %v159_v60 = vld [vmem:[%s2348_s1 + $0x3a0] sm:$0xff]  ;;  %v1378_v62 = vpack.c.bf16 %v110_v54, %v109_v53 }
  0x1e   :  { %1335 = vmatpush3.bf16.msra.mxu0 %v1334_v24  ;;  %v160_v61 = vld [vmem:[%s2348_s1 + $0x3a8] sm:$0xff]  ;;  %v1410_v63 = vpack.c.bf16 %v142_v57, %v141_v55  ;;  %v1380_v0 = vpack.c.bf16 %v128_v59, %v127_v58  ;;  %v111_v1 = vld [vmem:[%s2348_s1 + $0x220] sm:$0xff]  ;;  %v129_v6 = vld [vmem:[%s2348_s1 + $0x2b0] sm:$0xff] }
  0x1f   :  { %1367 = vmatpush3.bf16.msra.mxu1 %v1366_v25  ;;  %1337 = vmatprep.subr.bf16.mxu0 %v1336_v26  ;;  %v112_v2 = vld [vmem:[%s2348_s1 + $0x228] sm:$0xff]  ;;  %v143_v3 = vld [vmem:[%s2348_s1 + $0x320] sm:$0xff]  ;;  %v1412_v4 = vpack.c.bf16 %v160_v61, %v159_v60  ;;  %v130_v7 = vld [vmem:[%s2348_s1 + $0x2b8] sm:$0xff] }
  0x20   :  { %1369 = vmatprep.subr.bf16.mxu1 %v1368_v30  ;;  %v144_v5 = vld [vmem:[%s2348_s1 + $0x328] sm:$0xff]  ;;  %v113_v8 = vld [vmem:[%s2348_s1 + $0x230] sm:$0xff]  ;;  %v162_v10 = vld [vmem:[%s2348_s1 + $0x3b8] sm:$0xff]  ;;  %v1382_v11 = vpack.c.bf16 %v112_v2, %v111_v1  ;;  %v1384_v18 = vpack.c.bf16 %v130_v7, %v129_v6 }
  0x21   :  { %v161_v9 = vld [vmem:[%s2348_s1 + $0x3b0] sm:$0xff]  ;;  %v114_v12 = vld [vmem:[%s2348_s1 + $0x238] sm:$0xff]  ;;  %v1908_v14 = vld [vmem:[%s2347_s0 + $0x48] sm:$0xff]  ;;  %v1414_v15 = vpack.c.bf16 %v144_v5, %v143_v3 }
  0x22   :  { %1339 = vmatpush3.bf16.msra.mxu0 %v1338_v36  ;;  %v145_v13 = vld [vmem:[%s2348_s1 + $0x330] sm:$0xff]  ;;  %v146_v19 = vld [vmem:[%s2348_s1 + $0x338] sm:$0xff]  ;;  %v131_v20 = vld [vmem:[%s2348_s1 + $0x2c0] sm:$0xff]  ;;  %v1416_v22 = vpack.c.bf16 %v162_v10, %v161_v9  ;;  %v1386_v28 = vpack.c.bf16 %v114_v12, %v113_v8 }
  0x23   :  { %1371 = vmatpush3.bf16.msra.mxu1 %v1370_v37  ;;  %1373 = vmatprep.subr.bf16.mxu0 %v1372_v38  ;;  %v1919_v21 = vld [vmem:[%s2347_s0 + $0x58] sm:$0xff]  ;;  %v132_v23 = vld [vmem:[%s2348_s1 + $0x2c8] sm:$0xff]  ;;  %v1928_v24 = vld [vmem:[%s2347_s0 + $0x40] sm:$0xff]  ;;  %v1418_v31 = vpack.c.bf16 %v146_v19, %v145_v13 }
  0x24   :  { %1405 = vmatprep.subr.bf16.mxu1 %v1404_v42  ;;  %v1933_v25 = vld [vmem:[%s2347_s0 + $0x50] sm:$0xff]  ;;  %v163_v26 = vld [vmem:[%s2348_s1 + $0x3c0] sm:$0xff]  ;;  %v164_v27 = vld [vmem:[%s2348_s1 + $0x3c8] sm:$0xff]  ;;  %v1388_v32 = vpack.c.bf16 %v132_v23, %v131_v20 }
  0x25   :  { %236 = vmatmul.mubr.f32.vlgmr.msra.gmra.mrb[0].mxu0 %v1839_v48  ;;  %v115_v29 = vld [vmem:[%s2348_s1 + $0x240] sm:$0xff]  ;;  %v116_v30 = vld [vmem:[%s2348_s1 + $0x248] sm:$0xff]  ;;  %v1420_v36 = vpack.c.bf16 %v164_v27, %v163_v26  ;;  %v133_v37 = vld [vmem:[%s2348_s1 + $0x2d0] sm:$0xff] }
  0x26   :  { %311 = vmatmul.mubr.f32.vlgmr.msra.gmra.mrb[0].mxu1 %v1844_v49  ;;  %1375 = vmatpush3.bf16.msra.mxu0 %v1374_v50  ;;  %v147_v33 = vld [vmem:[%s2348_s1 + $0x340] sm:$0xff]  ;;  %v148_v34 = vld [vmem:[%s2348_s1 + $0x348] sm:$0xff]  ;;  %v134_v38 = vld [vmem:[%s2348_s1 + $0x2d8] sm:$0xff]  ;;  %v1390_v42 = vpack.c.bf16 %v116_v30, %v115_v29 }
  0x27   :  { %1407 = vmatpush3.bf16.msra.mxu1 %v1406_v51  ;;  %1377 = vmatprep.subr.bf16.mxu0 %v1376_v52  ;;  %v1959_v35 = vld [vmem:[%s2347_s0 + $0x28] sm:$0xff]  ;;  %v1971_v39 = vld [vmem:[%s2347_s0 + $0x38] sm:$0xff]  ;;  %v165_v40 = vld [vmem:[%s2348_s1 + $0x3d0] sm:$0xff] }
  0x28   :  { %1409 = vmatprep.subr.bf16.mxu1 %v1408_v56  ;;  %240 = vmatprep.mubr.f32.mxu0 %v1908_v14  ;;  %v166_v41 = vld [vmem:[%s2348_s1 + $0x3d8] sm:$0xff] }
  0x29   :  { %315 = vmatprep.mubr.f32.mxu1 %v1919_v21  ;;  %241 = vmatmul.mubr.f32.gmra.mrb[2].mxu0 %v1928_v24 }
  0x2a   :  { %1379 = vmatpush3.bf16.msra.mxu0 %v1378_v62  ;;  %316 = vmatmul.mubr.f32.gmra.mrb[2].mxu1 %v1933_v25 }
  0x2b   :  { %1411 = vmatpush3.bf16.msra.mxu1 %v1410_v63  ;;  %1381 = vmatprep.subr.bf16.mxu0 %v1380_v0 }
  0x2c   :  { %1413 = vmatprep.subr.bf16.mxu1 %v1412_v4  ;;  %385 = vmatprep.mubr.f32.mxu0 %v1959_v35 }
  0x2d   :  { %460 = vmatprep.mubr.f32.mxu1 %v1971_v39 }
  0x2e   :  { %1383 = vmatpush3.bf16.msra.mxu0 %v1382_v11 }
  0x2f   :  { %1415 = vmatpush3.bf16.msra.mxu1 %v1414_v15  ;;  %1385 = vmatprep.subr.bf16.mxu0 %v1384_v18 }
  0x30   :  { %1417 = vmatprep.subr.bf16.mxu1 %v1416_v22 }
  0x32   :  { %1387 = vmatpush3.bf16.msra.mxu0 %v1386_v28 }
  0x33   :  { %12 = vsyncpa [#allocation3], 0  ;;  %1419 = vmatpush3.bf16.msra.mxu1 %v1418_v31  ;;  %1389 = vmatprep.subr.bf16.mxu0 %v1388_v32  ;;  %v1422_v43 = vpack.c.bf16 %v148_v34, %v147_v33  ;;  %v1392_v44 = vpack.c.bf16 %v134_v38, %v133_v37  ;;  %v117_v45 = vld [vmem:[%s2348_s1 + $0x250] sm:$0xff]  ;;  %v118_v46 = vld [vmem:[%s2348_s1 + $0x258] sm:$0xff]  ;;  %v1424_v50 = vpack.c.bf16 %v166_v41, %v165_v40  ;;  %vm585_vm0 = vcmask 1043456  }
  0x34   :  { %v149_v47 = vld [vmem:[%s2348_s1 + $0x350] sm:$0xff]  ;;  %1421 = vmatprep.subr.bf16.mxu1 %v1420_v36  ;;  %v150_v51 = vld [vmem:[%s2348_s1 + $0x358] sm:$0xff]  ;;  %v135_v52 = vld [vmem:[%s2348_s1 + $0x2e0] sm:$0xff]  ;;  %v1394_v56 = vpack.c.bf16 %v118_v46, %v117_v45  ;;  %vm486_vm1 = vcmask 523264   ;;  %vm578_vm2 = vcmask 31744  }
  0x35   :  { %v136_v53 = vld [vmem:[%s2348_s1 + $0x2e8] sm:$0xff]  ;;  %v167_v54 = vld [vmem:[%s2348_s1 + $0x3e0] sm:$0xff]  ;;  %v1426_v57 = vpack.c.bf16 %v150_v51, %v149_v47  ;;  %v137_v0 = vld [vmem:[%s2348_s1 + $0x2f0] sm:$0xff] }
  0x36   :  { %v168_v55 = vld [vmem:[%s2348_s1 + $0x3e8] sm:$0xff]  ;;  %1391 = vmatpush3.bf16.msra.mxu0 %v1390_v42  ;;  %v1396_v58 = vpack.c.bf16 %v136_v53, %v135_v52  ;;  %v119_v59 = vld [vmem:[%s2348_s1 + $0x260] sm:$0xff]  ;;  %v138_v1 = vld [vmem:[%s2348_s1 + $0x2f8] sm:$0xff] }
  0x37   :  { %1423 = vmatpush3.bf16.msra.mxu1 %v1422_v43  ;;  %1393 = vmatprep.subr.bf16.mxu0 %v1392_v44  ;;  %v120_v60 = vld [vmem:[%s2348_s1 + $0x268] sm:$0xff]  ;;  %v151_v61 = vld [vmem:[%s2348_s1 + $0x360] sm:$0xff]  ;;  %v1428_v62 = vpack.c.bf16 %v168_v55, %v167_v54  ;;  %v169_v2 = vld [vmem:[%s2348_s1 + $0x3f0] sm:$0xff]  ;;  %v1400_v6 = vpack.c.bf16 %v138_v1, %v137_v0 }
  0x38   :  { %1425 = vmatprep.subr.bf16.mxu1 %v1424_v50  ;;  %v152_v63 = vld [vmem:[%s2348_s1 + $0x368] sm:$0xff]  ;;  %v170_v3 = vld [vmem:[%s2348_s1 + $0x3f8] sm:$0xff]  ;;  %v1398_v4 = vpack.c.bf16 %v120_v60, %v119_v59  ;;  %v121_v7 = vld [vmem:[%s2348_s1 + $0x270] sm:$0xff] }
  0x39   :  { %v1430_v5 = vpack.c.bf16 %v152_v63, %v151_v61  ;;  %v122_v8 = vld [vmem:[%s2348_s1 + $0x278] sm:$0xff]  ;;  %v1432_v9 = vpack.c.bf16 %v170_v3, %v169_v2  ;;  %v153_v10 = vld [vmem:[%s2348_s1 + $0x370] sm:$0xff]  ;;  %v2043_v15 = vld [vmem:[%s2347_s0 + $0x20] sm:$0xff] }
  0x3a   :  { %1395 = vmatpush3.bf16.msra.mxu0 %v1394_v56  ;;  %v154_v11 = vld [vmem:[%s2348_s1 + $0x378] sm:$0xff]  ;;  %v1402_v12 = vpack.c.bf16 %v122_v8, %v121_v7  ;;  %v2048_v18 = vld [vmem:[%s2347_s0 + $0x30] sm:$0xff]  ;;  %v2053_v19 = vld [vmem:[%s2347_s0 + $0x68] sm:$0xff] }
  0x3b   :  { %1427 = vmatpush3.bf16.msra.mxu1 %v1426_v57  ;;  %1397 = vmatprep.subr.bf16.mxu0 %v1396_v58  ;;  %v1434_v13 = vpack.c.bf16 %v154_v11, %v153_v10  ;;  %v2058_v20 = vld [vmem:[%s2347_s0 + $0x78] sm:$0xff]  ;;  %v2066_v22 = vld [vmem:[%s2347_s0 + $0x60] sm:$0xff]  ;;  %v2072_v23 = vld [vmem:[%s2347_s0 + $0x70] sm:$0xff] }
  0x3c   :  { %1429 = vmatprep.subr.bf16.mxu1 %v1428_v62  ;;  %v471_v26 = vld [vmem:[%s2350_s3] sm:$0xff]  ;;  %v472_v27 = vld [vmem:[%s2350_s3 + $0x8] sm:$0xff]  ;;  %v473_v29 = vld [vmem:[%s2350_s3 + $0x10] sm:$0xff] }
  0x3d   :  { %v1436_v28 = vpack.c.bf16 %v472_v27, %v471_v26  ;;  %v474_v30 = vld [vmem:[%s2350_s3 + $0x18] sm:$0xff]  ;;  %v475_v32 = vld [vmem:[%s2350_s3 + $0x20] sm:$0xff]  ;;  %v476_v33 = vld [vmem:[%s2350_s3 + $0x28] sm:$0xff] }
  0x3e   :  { %1399 = vmatpush3.bf16.msra.mxu0 %v1398_v4  ;;  %v1440_v31 = vpack.c.bf16 %v474_v30, %v473_v29  ;;  %v1444_v34 = vpack.c.bf16 %v476_v33, %v475_v32  ;;  %v477_v36 = vld [vmem:[%s2350_s3 + $0x30] sm:$0xff]  ;;  %v478_v37 = vld [vmem:[%s2350_s3 + $0x38] sm:$0xff]  ;;  %v570_v40 = vld [vmem:[%s2352_s5] sm:$0xf] }
  0x3f   :  { %1431 = vmatpush3.bf16.msra.mxu1 %v1430_v5  ;;  %1401 = vmatprep.subr.bf16.mxu0 %v1400_v6  ;;  %v1448_v38 = vpack.c.bf16 %v478_v37, %v477_v36  ;;  %v685_v29 = vld [vmem:[%s2349_s2 + $0x48] sm:$0xff]  ;;  %v679_v30 = vld [vmem:[%s2349_s2 + $0x18] sm:$0xff]  ;;  %v676_v33 = vld [vmem:[%s2349_s2] sm:$0xff] }
  0x40   :  { %1433 = vmatprep.subr.bf16.mxu1 %v1432_v9  ;;  %v1102_v9 = vld [vmem:[%s2351_s4] ss:$0 sm:$0xff]  ;;  %v687_v32 = vld [vmem:[%s2349_s2 + $0x58] sm:$0xff] }
  0x41   :  { %v1468_v36 = vpack.c.bf16 %v687_v32, %v679_v30  ;;  %v683_v32 = vld [vmem:[%s2349_s2 + $0x38] sm:$0xff] }
  0x42   :  { %1403 = vmatpush3.bf16.msra.mxu0 %v1402_v12 }
  0x43   :  { %1435 = vmatpush3.bf16.msra.mxu1 %v1434_v13  ;;  %1437 = vmatprep.subr.bf16.mxu0 %v1436_v28 }
  0x44   :  { %1303 = vmatprep.subr.msk.mxu1 %vm585_vm0, %v570_v40 }
  0x45   :  { %386 = vmatmul.mubr.f32.vlgmr.msra.gmra.mrb[4].mxu0 %v2043_v15 }
  0x46   :  { %461 = vmatmul.mubr.f32.vlgmr.msra.gmra.mrb[4].mxu1 %v2048_v18  ;;  %390 = vmatprep.mubr.f32.mxu0 %v2053_v19 }
  0x47   :  { %465 = vmatprep.mubr.f32.mxu1 %v2058_v20  ;;  %1439 = vmatpush3.bf16.msra.mxu0 %v1436_v28  ;;  %v677_v28 = vld [vmem:[%s2349_s2 + $0x8] sm:$0xff] }
  0x48   :  { %1441 = vmatprep.subr.bf16.mxu0 %v1440_v31  ;;  %1304 = vmatpush3.msk.msra.mxu1 %vm585_vm0, %v570_v40  ;;  %v686_v40 = vld [vmem:[%s2349_s2 + $0x50] sm:$0xff] }
  0x49   :  { %391 = vmatmul.mubr.f32.gmra.mrb[6].mxu0 %v2066_v22 }
  0x4a   :  { %466 = vmatmul.mubr.f32.gmra.mrb[6].mxu1 %v2072_v23 }
  0x4b   :  { %1443 = vmatpush3.bf16.msra.mxu0 %v1440_v31  ;;  %v1452_v31 = vpack.c.bf16 %v685_v29, %v677_v28  ;;  %v681_v28 = vld [vmem:[%s2349_s2 + $0x28] sm:$0xff] }
  0x4c   :  { %1445 = vmatprep.subr.bf16.mxu0 %v1444_v34  ;;  %v689_v29 = vld [vmem:[%s2349_s2 + $0x68] sm:$0xff] }
  0x4d   :  { %1453 = vmatprep.subr.bf16.mxu1 %v1452_v31  ;;  %v1484_v31 = vpack.c.bf16 %v689_v29, %v681_v28  ;;  %v729_v28 = vld [vmem:[%s2349_s2 + $0x1a8] sm:$0xff] }
  0x4f   :  { %1447 = vmatpush3.bf16.msra.mxu0 %v1444_v34  ;;  %v684_v34 = vld [vmem:[%s2349_s2 + $0x40] sm:$0xff] }
  0x50   :  { %1449 = vmatprep.subr.bf16.mxu0 %v1448_v38  ;;  %v1454_v37 = vpack.c.bf16 %v684_v34, %v676_v33  ;;  %v691_v33 = vld [vmem:[%s2349_s2 + $0x78] sm:$0xff] }
  0x51   :  { %v1500_v34 = vpack.c.bf16 %v691_v33, %v683_v32  ;;  %v739_v32 = vld [vmem:[%s2349_s2 + $0x1f8] sm:$0xff] }
  0x53   :  { %1451 = vmatpush3.bf16.msra.mxu0 %v1448_v38  ;;  %v678_v38 = vld [vmem:[%s2349_s2 + $0x10] sm:$0xff] }
  0x54   :  { %1469 = vmatprep.subr.bf16.mxu0 %v1468_v36  ;;  %v1105_v36 = vld [vmem:[%s2353_s6] ss:$0 sm:$0xff] }
  0xf8   :  { %v1151_v41 = vpop.f32.mrb[0].mxu0 }
  0xf9   :  { %v1189_v42 = vpop.f32.mrb[0].mxu1  ;;  %v1152_v43 = vpop.f32.mrb[1].mxu0 }
  0xfa   :  { %v1153_v44 = vadd.f32 %v1152_v43, %v1151_v41  ;;  %v1190_v45 = vpop.f32.mrb[1].mxu1  ;;  %v1470_v41 = vpack.c.bf16 %v686_v40, %v678_v38  ;;  %v701_v43 = vld [vmem:[%s2349_s2 + $0xc8] sm:$0xff] }
  0xfb   :  { %v1191_v46 = vadd.f32 %v1190_v45, %v1189_v42  ;;  %v693_v42 = vld [vmem:[%s2349_s2 + $0x88] sm:$0xff] }
  0xfc   :  { %v1154_v50 = vpop.f32.mrb[2].mxu0  ;;  %v1456_v45 = vpack.c.bf16 %v701_v43, %v693_v42 }
  0xfd   :  { %v313_v47 = vadd.f32 %v1191_v46, %v1153_v44  ;;  %v1192_v51 = vpop.f32.mrb[2].mxu1  ;;  %v1155_v52 = vpop.f32.mrb[3].mxu0  ;;  %v695_v44 = vld [vmem:[%s2349_s2 + $0x98] sm:$0xff] }
  0xfe   :  { %v1156_v53 = vadd.f32 %v1155_v52, %v1154_v50  ;;  %v1193_v54 = vpop.f32.mrb[3].mxu1  ;;  %v703_v46 = vld [vmem:[%s2349_s2 + $0xd8] sm:$0xff]  ;;  %v700_v50 = vld [vmem:[%s2349_s2 + $0xc0] sm:$0xff] }
  0xff   :  { %v1194_v55 = vadd.f32 %v1193_v54, %v1192_v51  ;;  %v1472_v51 = vpack.c.bf16 %v703_v46, %v695_v44  ;;  %v702_v54 = vld [vmem:[%s2349_s2 + $0xd0] sm:$0xff] }
 0x101   :  { %v318_v56 = vadd.f32 %v1194_v55, %v1156_v53  ;;  %v694_v53 = vld [vmem:[%s2349_s2 + $0x90] sm:$0xff] }
 0x102   :  { %v1474_v55 = vpack.c.bf16 %v702_v54, %v694_v53  ;;  %v690_v53 = vld [vmem:[%s2349_s2 + $0x70] sm:$0xff]  ;;  %v697_v54 = vld [vmem:[%s2349_s2 + $0xa8] sm:$0xff] }
 0x118   :  { %v1227_v57 = vpop.f32.mrb[4].mxu0 }
 0x119   :  { %v1228_v58 = vpop.f32.mrb[5].mxu0  ;;  %v1265_v59 = vpop.f32.mrb[4].mxu1 }
 0x11a   :  { %v1229_v60 = vadd.f32 %v1228_v58, %v1227_v57  ;;  %v1266_v61 = vpop.f32.mrb[5].mxu1  ;;  %v717_v57 = vld [vmem:[%s2349_s2 + $0x148] sm:$0xff]  ;;  %v711_v58 = vld [vmem:[%s2349_s2 + $0x118] sm:$0xff] }
 0x11b   :  { %v1267_v62 = vadd.f32 %v1266_v61, %v1265_v59  ;;  %v708_v61 = vld [vmem:[%s2349_s2 + $0x100] sm:$0xff] }
 0x11c   :  { %v388_v63 = vadd.f32 %v1229_v60, %v313_v47  ;;  %v1230_v0 = vpop.f32.mrb[6].mxu0  ;;  %v692_v47 = vld [vmem:[%s2349_s2 + $0x80] sm:$0xff]  ;;  %v719_v60 = vld [vmem:[%s2349_s2 + $0x158] sm:$0xff] }
 0x11d   :  { %v1231_v1 = vpop.f32.mrb[7].mxu0  ;;  %v1268_v2 = vpop.f32.mrb[6].mxu1  ;;  %v1458_v52 = vpack.c.bf16 %v700_v50, %v692_v47  ;;  %v680_v50 = vld [vmem:[%s2349_s2 + $0x20] sm:$0xff] }
 0x11e   :  { %v463_v3 = vadd.f32 %v1267_v62, %v388_v63  ;;  %v1232_v4 = vadd.f32 %v1231_v1, %v1230_v0  ;;  %v1269_v5 = vpop.f32.mrb[7].mxu1  ;;  %v716_v62 = vld [vmem:[%s2349_s2 + $0x140] sm:$0xff]  ;;  %v1552_v63 = vmov 0.0   ;;  %v1476_v0 = vpack.c.bf16 %v719_v60, %v711_v58 }
 0x11f   :  { %v1270_v6 = vadd.f32 %v1269_v5, %v1268_v2  ;;  %v1462_v1 = vpack.c.bf16 %v716_v62, %v708_v61  ;;  %v710_v2 = vld [vmem:[%s2349_s2 + $0x110] sm:$0xff]  ;;  %v696_v60 = vld [vmem:[%s2349_s2 + $0xa0] sm:$0xff] }
 0x120   :  { %v393_v7 = vadd.f32 %v1232_v4, %v318_v56  ;;  %1300 = vmatprep.mubr.msk.f32.mxu0 %vm486_vm1, %v463_v3  ;;  %v709_v56 = vld [vmem:[%s2349_s2 + $0x108] sm:$0xff]  ;;  %v718_v3 = vld [vmem:[%s2349_s2 + $0x150] sm:$0xff]  ;;  %v704_v61 = vld [vmem:[%s2349_s2 + $0xe0] sm:$0xff] }
 0x121   :  { %v1460_v59 = vpack.c.bf16 %v717_v57, %v709_v56  ;;  %v725_v4 = vld [vmem:[%s2349_s2 + $0x188] sm:$0xff]  ;;  %v1478_v5 = vpack.c.bf16 %v718_v3, %v710_v2  ;;  %v699_v56 = vld [vmem:[%s2349_s2 + $0xb8] sm:$0xff]  ;;  %v698_v62 = vld [vmem:[%s2349_s2 + $0xb0] sm:$0xff] }
 0x122   :  { %v468_v8 = vadd.f32 %v1270_v6, %v393_v7  ;;  %v733_v6 = vld [vmem:[%s2349_s2 + $0x1c8] sm:$0xff]  ;;  %v727_v7 = vld [vmem:[%s2349_s2 + $0x198] sm:$0xff] }
 0x123   :  { %v707_v57 = vld [vmem:[%s2349_s2 + $0xf8] sm:$0xff] }
 0x124   :  { %1301 = vmatmul.mubr.msk.f32.vlgmr.msra.gmra.mrb[8].mxu0 %vm486_vm1, %v468_v8  ;;  %v735_v8 = vld [vmem:[%s2349_s2 + $0x1d8] sm:$0xff] }
 0x125   :  { %1471 = vmatpush1.bf16.msra.mxu0 %v1470_v41  ;;  %887 = vmatprep.mubr.f32.mxu0 %v1552_v63 }
 0x126   :  { %1473 = vmatprep.subr.bf16.mxu0 %v1472_v51  ;;  %v688_v51 = vld [vmem:[%s2349_s2 + $0x60] sm:$0xff] }
 0x127   :  { %v1486_v58 = vpack.c.bf16 %v688_v51, %v680_v50 }
 0x129   :  { %1475 = vmatpush1.bf16.msra.mxu0 %v1474_v55  ;;  %v705_v55 = vld [vmem:[%s2349_s2 + $0xe8] sm:$0xff] }
 0x12a   :  { %1477 = vmatprep.subr.bf16.mxu0 %v1476_v0  ;;  %v706_v0 = vld [vmem:[%s2349_s2 + $0xf0] sm:$0xff]  ;;  %v1488_v3 = vpack.c.bf16 %v705_v55, %v697_v54 }
 0x12d   :  { %1479 = vmatpush1.bf16.msra.mxu0 %v1478_v5  ;;  %v721_v5 = vld [vmem:[%s2349_s2 + $0x168] sm:$0xff] }
 0x1f7   :  { %v1302_v10 = vpop.f32.mrb[8].mxu0 }
 0x1f8   :  { %v565_v11 = vadd.f32 %v1302_v10, %v1102_v9  ;;  %v559_v12 = vpop.f32.mrb[9].mxu0  ;;  %v1480_v10 = vpack.c.bf16 %v735_v8, %v727_v7  ;;  %v723_v7 = vld [vmem:[%s2349_s2 + $0x178] sm:$0xff]  ;;  %v1490_v8 = vpack.c.bf16 %v704_v61, %v696_v60 }
 0x1f9   :  { %v560_v13 = vadd.f32 %v1102_v9, %v559_v12  ;;  %v1464_v9 = vpack.c.bf16 %v733_v6, %v725_v4  ;;  %v732_v12 = vld [vmem:[%s2349_s2 + $0x1c0] sm:$0xff]  ;;  %v1504_v4 = vpack.c.bf16 %v707_v57, %v699_v56  ;;  %v715_v6 = vld [vmem:[%s2349_s2 + $0x138] sm:$0xff] }
 0x1fa   :  { %v569_v27 = vmax.f32 %v565_v11, 0.0  ;;  %v724_v11 = vld [vmem:[%s2349_s2 + $0x180] sm:$0xff]  ;;  %1481 = vmatprep.subr.bf16.mxu0 %v1480_v10 }
 0x1fb   :  { %v568_v26 = vmax.f32 %v560_v13, 0.0  ;;  %v726_v13 = vld [vmem:[%s2349_s2 + $0x190] sm:$0xff]  ;;  %v712_v10 = vld [vmem:[%s2349_s2 + $0x120] sm:$0xff] }
 0x1fd   :  { %1305 = vmatprep.mubr.msk.f32.mxu1 %vm578_vm2, %v568_v26  ;;  %v1466_v26 = vpack.c.bf16 %v732_v12, %v724_v11  ;;  %v720_v11 = vld [vmem:[%s2349_s2 + $0x160] sm:$0xff] }
 0x1fe   :  { %1306 = vmatmul.mubr.msk.f32.vlgmr.msra.gmra.mrb[8].mxu1 %vm578_vm2, %v569_v27  ;;  %v734_v27 = vld [vmem:[%s2349_s2 + $0x1d0] sm:$0xff]  ;;  %v1494_v33 = vpack.c.bf16 %v720_v11, %v712_v10 }
 0x1ff   :  { %1455 = vmatpush1.bf16.msra.mxu1 %v1454_v37  ;;  %810 = vmatprep.mubr.f32.mxu1 %v1552_v63  ;;  %v1482_v30 = vpack.c.bf16 %v734_v27, %v726_v13  ;;  %v1508_v13 = vpack.c.bf16 %v723_v7, %v715_v6  ;;  %v722_v27 = vld [vmem:[%s2349_s2 + $0x170] sm:$0xff] }
 0x200   :  { %1457 = vmatprep.subr.bf16.mxu1 %v1456_v45 }
 0x201   :  { %1483 = vmatpush1.bf16.msra.mxu0 %v1482_v30  ;;  %v737_v30 = vld [vmem:[%s2349_s2 + $0x1e8] sm:$0xff] }
 0x202   :  { %1501 = vmatprep.subr.bf16.mxu0 %v1500_v34 }
 0x203   :  { %1459 = vmatpush1.bf16.msra.mxu1 %v1458_v52  ;;  %v682_v52 = vld [vmem:[%s2349_s2 + $0x30] sm:$0xff] }
 0x204   :  { %1461 = vmatprep.subr.bf16.mxu1 %v1460_v59  ;;  %v1502_v59 = vpack.c.bf16 %v690_v53, %v682_v52 }
 0x207   :  { %1463 = vmatpush1.bf16.msra.mxu1 %v1462_v1  ;;  %v713_v1 = vld [vmem:[%s2349_s2 + $0x128] sm:$0xff] }
 0x208   :  { %1465 = vmatprep.subr.bf16.mxu1 %v1464_v9  ;;  %v1506_v9 = vpack.c.bf16 %v706_v0, %v698_v62  ;;  %v1492_v12 = vpack.c.bf16 %v721_v5, %v713_v1 }
 0x20b   :  { %1467 = vmatpush1.bf16.msra.mxu1 %v1466_v26  ;;  %v714_v26 = vld [vmem:[%s2349_s2 + $0x130] sm:$0xff] }
 0x20c   :  { %1485 = vmatprep.subr.bf16.mxu1 %v1484_v31  ;;  %v731_v31 = vld [vmem:[%s2349_s2 + $0x1b8] sm:$0xff]  ;;  %v1510_v34 = vpack.c.bf16 %v722_v27, %v714_v26 }
 0x2d1   :  { %v1307_v37 = vpop.f32.mrb[8].mxu1 }
 0x2d2   :  { %v661_v38 = vadd.f32 %v1307_v37, %v1105_v36  ;;  %v655_v40 = vpop.f32.mrb[9].mxu1  ;;  %v1496_v37 = vpack.c.bf16 %v737_v30, %v729_v28 }
 0x2d3   :  { %v656_v41 = vadd.f32 %v1105_v36, %v655_v40  ;;  %v728_v36 = vld [vmem:[%s2349_s2 + $0x1a0] sm:$0xff] }
 0x2d4   :  { %v1110_v42 = vmul.f32 -1.442695, %v661_v38  ;;  %v1512_v38 = vpack.c.bf16 %v739_v32, %v731_v31  ;;  %v736_v40 = vld [vmem:[%s2349_s2 + $0x1e0] sm:$0xff] }
 0x2d5   :  { %v1109_v43 = vmul.f32 -1.442695, %v656_v41  ;;  %v730_v41 = vld [vmem:[%s2349_s2 + $0x1b0] sm:$0xff] }
 0x2d6   :  { %1520 = vpow2.f32 %v1110_v42  ;;  %v738_v42 = vld [vmem:[%s2349_s2 + $0x1f0] sm:$0xff]  ;;  %s1553_s2 = smov [#allocation2]  }
 0x2d7   :  { %1522 = vpow2.f32 %v1109_v43  ;;  %v1498_v43 = vpack.c.bf16 %v736_v40, %v728_v36  ;;  %s1091_s19 = sshll.u32 %s1553_s2, 4  ;;  %s1092_s19 = int_to_ptr.vmem [resolvable:$true] %s1091_s19 }
 0x2d8   :  { %s1528_s20 = scalar_lea.vmem %s1092_s19, 2048  ;;  %p1533_p1 = scmp.lt.s32.totalorder %s1092_s19, %s1092_s19 }
 0x2d9   :  { %p1529_p0 = scmp.ne.s32.totalorder %s1092_s19, %s1528_s20  ;;  %p1534_p2 = scmp.lt.s32.totalorder %s1528_s20, %s1528_s20 }
 0x2db   :  { %p1535_p3 = por %p1534_p2, %p1533_p1 }
 0x2dd   :  { %p1536_p4 = pnand %p1535_p3, %p1529_p0 }
 0x2e0   :  { %v1521_v44 = vpop.eup %1520 }
 0x2e1   :  { %v1523_v45 = vpop.eup %1522  ;;  %v671_v47 = vadd.f32 1.0, %v1521_v44  ;;  %v1514_v44 = vpack.c.bf16 %v738_v42, %v730_v41 }
 0x2e2   :  { %v670_v46 = vadd.f32 1.0, %v1523_v45 }
 0x2e4   :  { %1524 = vrcp.f32 %v670_v46 }
 0x2e5   :  { %1526 = vrcp.f32 %v671_v47 }
 0x2ee   :  { %v1525_v2 = vpop.eup %1524 }
 0x2ef   :  { %1111 = vmatmul.mubr.msk.f32.vlgmr.msra.gmra.mrb[10].mxu1 %vm486_vm1, %v1525_v2  ;;  %1113 = vmatmul.mubr.msk.f32.vlgmr.msra.gmra.mrb[10].mxu0 %vm486_vm1, %v1525_v2  ;;  %v1527_v29 = vpop.eup %1526 }
 0x2f0   :  { %1487 = vmatpush1.bf16.msra.mxu1 %v1486_v58  ;;  %1503 = vmatpush1.bf16.msra.mxu0 %v1502_v59 }
 0x2f1   :  { %816 = vmatprep.mubr.f32.mxu1 %v1552_v63  ;;  %893 = vmatprep.mubr.f32.mxu0 %v1552_v63 }
 0x2f2   :  { %1489 = vmatprep.subr.bf16.mxu1 %v1488_v3  ;;  %1505 = vmatprep.subr.bf16.mxu0 %v1504_v4 }
 0x2f3   :  { %1112 = vmatmul.mubr.msk.f32.gmra.mrb[12].mxu1 %vm486_vm1, %v1527_v29  ;;  %1114 = vmatmul.mubr.msk.f32.gmra.mrb[12].mxu0 %vm486_vm1, %v1527_v29 }
 0x2f4   :  { %1491 = vmatpush1.bf16.msra.mxu1 %v1490_v8  ;;  %1507 = vmatpush1.bf16.msra.mxu0 %v1506_v9 }
 0x2f5   :  { %1493 = vmatprep.subr.bf16.mxu1 %v1492_v12  ;;  %1509 = vmatprep.subr.bf16.mxu0 %v1508_v13 }
 0x2f6   :  { %964 = vmatprep.mubr.f32.mxu1 %v1552_v63  ;;  %1041 = vmatprep.mubr.f32.mxu0 %v1552_v63 }
 0x2f8   :  { %1495 = vmatpush1.bf16.msra.mxu1 %v1494_v33  ;;  %1511 = vmatpush1.bf16.msra.mxu0 %v1510_v34 }
 0x2f9   :  { %1497 = vmatprep.subr.bf16.mxu1 %v1496_v37  ;;  %1513 = vmatprep.subr.bf16.mxu0 %v1512_v38 }
 0x2fc   :  { %1499 = vmatpush1.bf16.msra.mxu1 %v1498_v43  ;;  %1515 = vmatpush1.bf16.msra.mxu0 %v1514_v44 }
 0x2ff   :  { %1115 = vmatmul.mubr.msk.f32.vlgmr.msra.gmra.mrb[14].mxu1 %vm486_vm1, %v1525_v2  ;;  %1117 = vmatmul.mubr.msk.f32.vlgmr.msra.gmra.mrb[14].mxu0 %vm486_vm1, %v1525_v2 }
 0x300   :  { %970 = vmatprep.mubr.f32.mxu1 %v1552_v63  ;;  %1047 = vmatprep.mubr.f32.mxu0 %v1552_v63 }
 0x303   :  { %1116 = vmatmul.mubr.msk.f32.gmra.mrb[16].mxu1 %vm486_vm1, %v1527_v29  ;;  %1118 = vmatmul.mubr.msk.f32.gmra.mrb[16].mxu0 %vm486_vm1, %v1527_v29 }
 0x3c2   :  { %v812_v45 = vpop.f32.mrb[10].mxu1  ;;  %v889_v46 = vpop.f32.mrb[10].mxu0 }
 0x3c3   :  { %v1054_v47 = vmul.f32 %v812_v45, %v1839_v48  ;;  %v1056_v50 = vmul.f32 %v889_v46, %v1844_v49  ;;  %v814_v51 = vpop.f32.mrb[11].mxu1  ;;  %v891_v52 = vpop.f32.mrb[11].mxu0 }
 0x3c4   :  { %v1055_v53 = vmul.f32 %v814_v51, %v1764_v16  ;;  %v1057_v54 = vmul.f32 %v891_v52, %v1769_v17 }
 0x3c5   :  { %1070 = vst [vmem:[#allocation2] sm:$0xff] %v1054_v47  ;;  %1072 = vst [vmem:[#allocation2 + $0x10] sm:$0xff] %v1056_v50 }
 0x3c6   :  { %1071 = vst [vmem:[#allocation2 + $0x8] sm:$0xff] %v1055_v53  ;;  %1073 = vst [vmem:[#allocation2 + $0x18] sm:$0xff] %v1057_v54  ;;  %v818_v63 = vpop.f32.mrb[12].mxu1  ;;  %v895_v55 = vpop.f32.mrb[12].mxu0 }
 0x3c7   :  { %v1062_v56 = vmul.f32 %v818_v63, %v1928_v24  ;;  %v1064_v57 = vmul.f32 %v895_v55, %v1933_v25  ;;  %v820_v58 = vpop.f32.mrb[13].mxu1  ;;  %v897_v48 = vpop.f32.mrb[13].mxu0 }
 0x3c8   :  { %v1063_v49 = vmul.f32 %v820_v58, %v1908_v14  ;;  %v1065_v59 = vmul.f32 %v897_v48, %v1919_v21 }
 0x3c9   :  { %1078 = vst [vmem:[#allocation2 + $0x40] sm:$0xff] %v1062_v56  ;;  %1080 = vst [vmem:[#allocation2 + $0x50] sm:$0xff] %v1064_v57 }
 0x3ca   :  { %1079 = vst [vmem:[#allocation2 + $0x48] sm:$0xff] %v1063_v49  ;;  %1081 = vst [vmem:[#allocation2 + $0x58] sm:$0xff] %v1065_v59 }
 0x3d2   :  { %v966_v16 = vpop.f32.mrb[14].mxu1  ;;  %v1043_v17 = vpop.f32.mrb[14].mxu0 }
 0x3d3   :  { %v1058_v60 = vmul.f32 %v966_v16, %v2043_v15  ;;  %v1060_v61 = vmul.f32 %v1043_v17, %v2048_v18  ;;  %v968_v62 = vpop.f32.mrb[15].mxu1  ;;  %v1045_v24 = vpop.f32.mrb[15].mxu0 }
 0x3d4   :  { %v1059_v25 = vmul.f32 %v968_v62, %v1959_v35  ;;  %v1061_v0 = vmul.f32 %v1045_v24, %v1971_v39 }
 0x3d5   :  { %1074 = vst [vmem:[#allocation2 + $0x20] sm:$0xff] %v1058_v60  ;;  %1076 = vst [vmem:[#allocation2 + $0x30] sm:$0xff] %v1060_v61 }
 0x3d6   :  { %1075 = vst [vmem:[#allocation2 + $0x28] sm:$0xff] %v1059_v25  ;;  %1077 = vst [vmem:[#allocation2 + $0x38] sm:$0xff] %v1061_v0  ;;  %v972_v14 = vpop.f32.mrb[16].mxu1  ;;  %v1049_v21 = vpop.f32.mrb[16].mxu0 }
 0x3d7   :  { %v1066_v1 = vmul.f32 %v972_v14, %v2066_v22  ;;  %v1068_v15 = vmul.f32 %v1049_v21, %v2072_v23  ;;  %v974_v2 = vpop.f32.mrb[17].mxu1  ;;  %v1051_v18 = vpop.f32.mrb[17].mxu0 }
 0x3d8   :  { %v1067_v3 = vmul.f32 %v974_v2, %v2053_v19  ;;  %v1069_v35 = vmul.f32 %v1051_v18, %v2058_v20 }
 0x3d9   :  { %1082 = vst [vmem:[#allocation2 + $0x60] sm:$0xff] %v1066_v1  ;;  %1084 = vst [vmem:[#allocation2 + $0x70] sm:$0xff] %v1068_v15 }
 0x3da   :  { %1083 = vst [vmem:[#allocation2 + $0x68] sm:$0xff] %v1067_v3  ;;  %1085 = vst [vmem:[#allocation2 + $0x78] sm:$0xff] %v1069_v35 }
 0x3db   :  { %1539 = shalt.err (!%p1536_p4)
}
 0x3dc   :  { %s1540_s23 = scalar_lea.hbm %s2354_s7, 2048 }
 0x3dd   :  { %p1541_p5 = scmp.ne.s32.totalorder %s2354_s7, %s1540_s23  ;;  %p1544_p6 = scmp.lt.u32.totalorder %s1540_s23, %s2354_s7 }
 0x3df   :  { %p1546_p7 = pnand %p1544_p6, %p1541_p5 }
 0x3e1   :  { %1549 = shalt.err (!%p1546_p7)
}
 0x3e2   :  { %s1554_s27 = smov 1024   ;;  %s1555_s28 = smov 64  }
 0x3e3   :  { %1097 = dma.vmem_to_hbm [thread:$0]  %s1092_s19, 2048, %s2354_s7, [#allocation3], %s1554_s27, %s1554_s27, %s1555_s28  }
 0x3e4   :  { %1550 = dma.done.wait [#allocation3], 2048  }
 0x3e5   :  { %1551 = vsyncadd [#allocation3], 4294965248 }
 0x3e6   :  { %1101 = vsyncpa [#allocation3], 1 }

// kernel: tpu_custom_call.1
= control target key start
LH: loop header
LB: loop body
LE: loop exit
PB: predicated region body
PF: predicated region fallthrough
CT: control target
= control target key end

     0   :  { %s2347_s0 = inlined_call_operand.vmem [shape: f32[16,1024], index: 0, kind: input, shape index: {}]   ;;  %s2348_s1 = inlined_call_operand.vmem [shape: f32[1024,64], index: 1, kind: input, shape index: {}]   ;;  %s2349_s2 = inlined_call_operand.vmem [shape: f32[64,1024], index: 2, kind: input, shape index: {}]   ;;  %s2350_s3 = inlined_call_operand.vmem [shape: f32[64,4], index: 3, kind: input, shape index: {}]   ;;  %s2351_s4 = inlined_call_operand.vmem [shape: f32[1,4], index: 4, kind: input, shape index: {}]   ;;  %s2352_s5 = inlined_call_operand.vmem [shape: f32[4,64], index: 5, kind: input, shape index: {}]   ;;  %s2353_s6 = inlined_call_operand.vmem [shape: f32[1,64], index: 6, kind: input, shape index: {}]   ;;  %s2354_s7 = inlined_call_operand.hbm [shape: f32[16,1024], index: 7, kind: output, shape index: {}]  }
   0x1   :  { %v59_v0 = vld [vmem:[%s2348_s1 + $0x80] sm:$0xff]  ;;  %v60_v1 = vld [vmem:[%s2348_s1 + $0x88] sm:$0xff]  ;;  %v61_v11 = vld [vmem:[%s2348_s1 + $0x90] sm:$0xff] }
   0x2   :  { %v91_v2 = vld [vmem:[%s2348_s1 + $0x180] sm:$0xff]  ;;  %v1308_v3 = vpack.c.bf16 %v60_v1, %v59_v0  ;;  %v92_v4 = vld [vmem:[%s2348_s1 + $0x188] sm:$0xff]  ;;  %v62_v13 = vld [vmem:[%s2348_s1 + $0x98] sm:$0xff] }
   0x3   :  { %v43_v5 = vld [vmem:[%s2348_s1] sm:$0xff]  ;;  %v44_v6 = vld [vmem:[%s2348_s1 + $0x8] sm:$0xff]  ;;  %v1340_v7 = vpack.c.bf16 %v92_v4, %v91_v2  ;;  %v93_v14 = vld [vmem:[%s2348_s1 + $0x190] sm:$0xff]  ;;  %v1312_v16 = vpack.c.bf16 %v62_v13, %v61_v11 }
   0x4   :  { %v1310_v8 = vpack.c.bf16 %v44_v6, %v43_v5  ;;  %v75_v9 = vld [vmem:[%s2348_s1 + $0x100] sm:$0xff]  ;;  %v76_v10 = vld [vmem:[%s2348_s1 + $0x108] sm:$0xff]  ;;  %1309 = vmatprep.subr.bf16.mxu0 %v1308_v3  ;;  %v94_v15 = vld [vmem:[%s2348_s1 + $0x198] sm:$0xff] }
   0x5   :  { %v1342_v12 = vpack.c.bf16 %v76_v10, %v75_v9  ;;  %1341 = vmatprep.subr.bf16.mxu1 %v1340_v7  ;;  %v1344_v17 = vpack.c.bf16 %v94_v15, %v93_v14  ;;  %v45_v18 = vld [vmem:[%s2348_s1 + $0x10] sm:$0xff]  ;;  %v46_v19 = vld [vmem:[%s2348_s1 + $0x18] sm:$0xff]  ;;  %v63_v23 = vld [vmem:[%s2348_s1 + $0xa0] sm:$0xff] }
   0x6   :  { %1311 = vmatpush3.bf16.msra.mxu0 %v1310_v8  ;;  %v77_v20 = vld [vmem:[%s2348_s1 + $0x110] sm:$0xff]  ;;  %v1314_v21 = vpack.c.bf16 %v46_v19, %v45_v18  ;;  %v78_v22 = vld [vmem:[%s2348_s1 + $0x118] sm:$0xff]  ;;  %v64_v24 = vld [vmem:[%s2348_s1 + $0xa8] sm:$0xff] }
   0x7   :  { %1343 = vmatpush3.bf16.msra.mxu1 %v1342_v12  ;;  %1313 = vmatprep.subr.bf16.mxu0 %v1312_v16  ;;  %v1346_v25 = vpack.c.bf16 %v78_v22, %v77_v20  ;;  %v1316_v26 = vpack.c.bf16 %v64_v24, %v63_v23  ;;  %v95_v27 = vld [vmem:[%s2348_s1 + $0x1a0] sm:$0xff]  ;;  %v96_v28 = vld [vmem:[%s2348_s1 + $0x1a8] sm:$0xff]  ;;  %v65_v35 = vld [vmem:[%s2348_s1 + $0xb0] sm:$0xff] }
   0x8   :  { %1345 = vmatprep.subr.bf16.mxu1 %v1344_v17  ;;  %v47_v29 = vld [vmem:[%s2348_s1 + $0x20] sm:$0xff]  ;;  %v1348_v30 = vpack.c.bf16 %v96_v28, %v95_v27  ;;  %v48_v31 = vld [vmem:[%s2348_s1 + $0x28] sm:$0xff]  ;;  %v66_v36 = vld [vmem:[%s2348_s1 + $0xb8] sm:$0xff] }
   0x9   :  { %v79_v32 = vld [vmem:[%s2348_s1 + $0x120] sm:$0xff]  ;;  %v80_v33 = vld [vmem:[%s2348_s1 + $0x128] sm:$0xff]  ;;  %v1318_v34 = vpack.c.bf16 %v48_v31, %v47_v29  ;;  %v97_v37 = vld [vmem:[%s2348_s1 + $0x1b0] sm:$0xff]  ;;  %v1320_v39 = vpack.c.bf16 %v66_v36, %v65_v35 }
   0xa   :  { %1315 = vmatpush3.bf16.msra.mxu0 %v1314_v21  ;;  %v1350_v38 = vpack.c.bf16 %v80_v33, %v79_v32  ;;  %v98_v40 = vld [vmem:[%s2348_s1 + $0x1b8] sm:$0xff]  ;;  %v49_v41 = vld [vmem:[%s2348_s1 + $0x30] sm:$0xff]  ;;  %v67_v46 = vld [vmem:[%s2348_s1 + $0xc0] sm:$0xff] }
   0xb   :  { %1347 = vmatpush3.bf16.msra.mxu1 %v1346_v25  ;;  %1317 = vmatprep.subr.bf16.mxu0 %v1316_v26  ;;  %v50_v42 = vld [vmem:[%s2348_s1 + $0x38] sm:$0xff]  ;;  %v1352_v43 = vpack.c.bf16 %v98_v40, %v97_v37  ;;  %v81_v44 = vld [vmem:[%s2348_s1 + $0x130] sm:$0xff]  ;;  %v68_v47 = vld [vmem:[%s2348_s1 + $0xc8] sm:$0xff] }
   0xc   :  { %1349 = vmatprep.subr.bf16.mxu1 %v1348_v30  ;;  %v82_v45 = vld [vmem:[%s2348_s1 + $0x138] sm:$0xff]  ;;  %v99_v48 = vld [vmem:[%s2348_s1 + $0x1c0] sm:$0xff]  ;;  %v100_v49 = vld [vmem:[%s2348_s1 + $0x1c8] sm:$0xff]  ;;  %v1322_v50 = vpack.c.bf16 %v50_v42, %v49_v41  ;;  %v1324_v52 = vpack.c.bf16 %v68_v47, %v67_v46 }
   0xd   :  { %v1354_v51 = vpack.c.bf16 %v82_v45, %v81_v44  ;;  %v51_v53 = vld [vmem:[%s2348_s1 + $0x40] sm:$0xff]  ;;  %v52_v54 = vld [vmem:[%s2348_s1 + $0x48] sm:$0xff]  ;;  %v1356_v56 = vpack.c.bf16 %v100_v49, %v99_v48  ;;  %v69_v58 = vld [vmem:[%s2348_s1 + $0xd0] sm:$0xff] }
   0xe   :  { %1319 = vmatpush3.bf16.msra.mxu0 %v1318_v34  ;;  %v83_v55 = vld [vmem:[%s2348_s1 + $0x140] sm:$0xff]  ;;  %v84_v57 = vld [vmem:[%s2348_s1 + $0x148] sm:$0xff]  ;;  %v70_v59 = vld [vmem:[%s2348_s1 + $0xd8] sm:$0xff]  ;;  %v1326_v62 = vpack.c.bf16 %v52_v54, %v51_v53 }
   0xf   :  { %1351 = vmatpush3.bf16.msra.mxu1 %v1350_v38  ;;  %1321 = vmatprep.subr.bf16.mxu0 %v1320_v39  ;;  %v101_v60 = vld [vmem:[%s2348_s1 + $0x1d0] sm:$0xff]  ;;  %v102_v61 = vld [vmem:[%s2348_s1 + $0x1d8] sm:$0xff]  ;;  %v1358_v63 = vpack.c.bf16 %v84_v57, %v83_v55  ;;  %v1328_v0 = vpack.c.bf16 %v70_v59, %v69_v58  ;;  %v71_v6 = vld [vmem:[%s2348_s1 + $0xe0] sm:$0xff] }
  0x10   :  { %1353 = vmatprep.subr.bf16.mxu1 %v1352_v43  ;;  %v53_v1 = vld [vmem:[%s2348_s1 + $0x50] sm:$0xff]  ;;  %v54_v2 = vld [vmem:[%s2348_s1 + $0x58] sm:$0xff]  ;;  %v1360_v4 = vpack.c.bf16 %v102_v61, %v101_v60  ;;  %v72_v7 = vld [vmem:[%s2348_s1 + $0xe8] sm:$0xff] }
  0x11   :  { %v85_v3 = vld [vmem:[%s2348_s1 + $0x150] sm:$0xff]  ;;  %v86_v5 = vld [vmem:[%s2348_s1 + $0x158] sm:$0xff]  ;;  %v103_v8 = vld [vmem:[%s2348_s1 + $0x1e0] sm:$0xff]  ;;  %v1330_v10 = vpack.c.bf16 %v54_v2, %v53_v1  ;;  %v1332_v14 = vpack.c.bf16 %v72_v7, %v71_v6 }
  0x12   :  { %1323 = vmatpush3.bf16.msra.mxu0 %v1322_v50  ;;  %v104_v9 = vld [vmem:[%s2348_s1 + $0x1e8] sm:$0xff]  ;;  %v55_v11 = vld [vmem:[%s2348_s1 + $0x60] sm:$0xff]  ;;  %v1362_v13 = vpack.c.bf16 %v86_v5, %v85_v3  ;;  %v1769_v17 = vld [vmem:[%s2347_s0 + $0x18] sm:$0xff] }
  0x13   :  { %1355 = vmatpush3.bf16.msra.mxu1 %v1354_v51  ;;  %1325 = vmatprep.subr.bf16.mxu0 %v1324_v52  ;;  %v56_v12 = vld [vmem:[%s2348_s1 + $0x68] sm:$0xff]  ;;  %v87_v15 = vld [vmem:[%s2348_s1 + $0x160] sm:$0xff]  ;;  %v1364_v18 = vpack.c.bf16 %v104_v9, %v103_v8  ;;  %v73_v20 = vld [vmem:[%s2348_s1 + $0xf0] sm:$0xff] }
  0x14   :  { %1357 = vmatprep.subr.bf16.mxu1 %v1356_v56  ;;  %v1764_v16 = vld [vmem:[%s2347_s0 + $0x8] sm:$0xff]  ;;  %v74_v21 = vld [vmem:[%s2348_s1 + $0xf8] sm:$0xff]  ;;  %v105_v22 = vld [vmem:[%s2348_s1 + $0x1f0] sm:$0xff]  ;;  %310 = vmatprep.mubr.f32.mxu1 %v1769_v17  ;;  %v1334_v24 = vpack.c.bf16 %v56_v12, %v55_v11 }
  0x15   :  { %v88_v19 = vld [vmem:[%s2348_s1 + $0x168] sm:$0xff]  ;;  %235 = vmatprep.mubr.f32.mxu0 %v1764_v16  ;;  %v106_v23 = vld [vmem:[%s2348_s1 + $0x1f8] sm:$0xff]  ;;  %v1336_v26 = vpack.c.bf16 %v74_v21, %v73_v20  ;;  %v57_v27 = vld [vmem:[%s2348_s1 + $0x70] sm:$0xff] }
  0x16   :  { %1327 = vmatpush3.bf16.msra.mxu0 %v1326_v62  ;;  %v1366_v25 = vpack.c.bf16 %v88_v19, %v87_v15  ;;  %v58_v28 = vld [vmem:[%s2348_s1 + $0x78] sm:$0xff]  ;;  %v89_v29 = vld [vmem:[%s2348_s1 + $0x170] sm:$0xff]  ;;  %v1368_v30 = vpack.c.bf16 %v106_v23, %v105_v22  ;;  %v123_v32 = vld [vmem:[%s2348_s1 + $0x280] sm:$0xff] }
  0x17   :  { %1359 = vmatpush3.bf16.msra.mxu1 %v1358_v63  ;;  %1329 = vmatprep.subr.bf16.mxu0 %v1328_v0  ;;  %v90_v31 = vld [vmem:[%s2348_s1 + $0x178] sm:$0xff]  ;;  %v124_v33 = vld [vmem:[%s2348_s1 + $0x288] sm:$0xff]  ;;  %v155_v34 = vld [vmem:[%s2348_s1 + $0x380] sm:$0xff]  ;;  %v1338_v36 = vpack.c.bf16 %v58_v28, %v57_v27 }
  0x18   :  { %1361 = vmatprep.subr.bf16.mxu1 %v1360_v4  ;;  %v156_v35 = vld [vmem:[%s2348_s1 + $0x388] sm:$0xff]  ;;  %v1370_v37 = vpack.c.bf16 %v90_v31, %v89_v29  ;;  %v1372_v38 = vpack.c.bf16 %v124_v33, %v123_v32  ;;  %v107_v39 = vld [vmem:[%s2348_s1 + $0x200] sm:$0xff]  ;;  %v125_v44 = vld [vmem:[%s2348_s1 + $0x290] sm:$0xff] }
  0x19   :  { %v108_v40 = vld [vmem:[%s2348_s1 + $0x208] sm:$0xff]  ;;  %v139_v41 = vld [vmem:[%s2348_s1 + $0x300] sm:$0xff]  ;;  %v1404_v42 = vpack.c.bf16 %v156_v35, %v155_v34  ;;  %v126_v45 = vld [vmem:[%s2348_s1 + $0x298] sm:$0xff] }
  0x1a   :  { %1331 = vmatpush3.bf16.msra.mxu0 %v1330_v10  ;;  %v140_v43 = vld [vmem:[%s2348_s1 + $0x308] sm:$0xff]  ;;  %v157_v46 = vld [vmem:[%s2348_s1 + $0x390] sm:$0xff]  ;;  %v158_v47 = vld [vmem:[%s2348_s1 + $0x398] sm:$0xff]  ;;  %v1374_v50 = vpack.c.bf16 %v108_v40, %v107_v39  ;;  %v1376_v52 = vpack.c.bf16 %v126_v45, %v125_v44 }
  0x1b   :  { %1363 = vmatpush3.bf16.msra.mxu1 %v1362_v13  ;;  %1333 = vmatprep.subr.bf16.mxu0 %v1332_v14  ;;  %v1839_v48 = vld [vmem:[%s2347_s0] sm:$0xff]  ;;  %v1844_v49 = vld [vmem:[%s2347_s0 + $0x10] sm:$0xff]  ;;  %v1406_v51 = vpack.c.bf16 %v140_v43, %v139_v41  ;;  %v110_v54 = vld [vmem:[%s2348_s1 + $0x218] sm:$0xff]  ;;  %v1408_v56 = vpack.c.bf16 %v158_v47, %v157_v46 }
  0x1c   :  { %1365 = vmatprep.subr.bf16.mxu1 %v1364_v18  ;;  %v109_v53 = vld [vmem:[%s2348_s1 + $0x210] sm:$0xff]  ;;  %v142_v57 = vld [vmem:[%s2348_s1 + $0x318] sm:$0xff]  ;;  %v127_v58 = vld [vmem:[%s2348_s1 + $0x2a0] sm:$0xff] }
  0x1d   :  { %v141_v55 = vld [vmem:[%s2348_s1 + $0x310] sm:$0xff]  ;;  %v128_v59 = vld [vmem:[%s2348_s1 + $0x2a8] sm:$0xff]  ;;  %v159_v60 = vld [vmem:[%s2348_s1 + $0x3a0] sm:$0xff]  ;;  %v1378_v62 = vpack.c.bf16 %v110_v54, %v109_v53 }
  0x1e   :  { %1335 = vmatpush3.bf16.msra.mxu0 %v1334_v24  ;;  %v160_v61 = vld [vmem:[%s2348_s1 + $0x3a8] sm:$0xff]  ;;  %v1410_v63 = vpack.c.bf16 %v142_v57, %v141_v55  ;;  %v1380_v0 = vpack.c.bf16 %v128_v59, %v127_v58  ;;  %v111_v1 = vld [vmem:[%s2348_s1 + $0x220] sm:$0xff]  ;;  %v129_v6 = vld [vmem:[%s2348_s1 + $0x2b0] sm:$0xff] }
  0x1f   :  { %1367 = vmatpush3.bf16.msra.mxu1 %v1366_v25  ;;  %1337 = vmatprep.subr.bf16.mxu0 %v1336_v26  ;;  %v112_v2 = vld [vmem:[%s2348_s1 + $0x228] sm:$0xff]  ;;  %v143_v3 = vld [vmem:[%s2348_s1 + $0x320] sm:$0xff]  ;;  %v1412_v4 = vpack.c.bf16 %v160_v61, %v159_v60  ;;  %v130_v7 = vld [vmem:[%s2348_s1 + $0x2b8] sm:$0xff] }
  0x20   :  { %1369 = vmatprep.subr.bf16.mxu1 %v1368_v30  ;;  %v144_v5 = vld [vmem:[%s2348_s1 + $0x328] sm:$0xff]  ;;  %v113_v8 = vld [vmem:[%s2348_s1 + $0x230] sm:$0xff]  ;;  %v162_v10 = vld [vmem:[%s2348_s1 + $0x3b8] sm:$0xff]  ;;  %v1382_v11 = vpack.c.bf16 %v112_v2, %v111_v1  ;;  %v1384_v18 = vpack.c.bf16 %v130_v7, %v129_v6 }
  0x21   :  { %v161_v9 = vld [vmem:[%s2348_s1 + $0x3b0] sm:$0xff]  ;;  %v114_v12 = vld [vmem:[%s2348_s1 + $0x238] sm:$0xff]  ;;  %v1908_v14 = vld [vmem:[%s2347_s0 + $0x48] sm:$0xff]  ;;  %v1414_v15 = vpack.c.bf16 %v144_v5, %v143_v3 }
  0x22   :  { %1339 = vmatpush3.bf16.msra.mxu0 %v1338_v36  ;;  %v145_v13 = vld [vmem:[%s2348_s1 + $0x330] sm:$0xff]  ;;  %v146_v19 = vld [vmem:[%s2348_s1 + $0x338] sm:$0xff]  ;;  %v131_v20 = vld [vmem:[%s2348_s1 + $0x2c0] sm:$0xff]  ;;  %v1416_v22 = vpack.c.bf16 %v162_v10, %v161_v9  ;;  %v1386_v28 = vpack.c.bf16 %v114_v12, %v113_v8 }
  0x23   :  { %1371 = vmatpush3.bf16.msra.mxu1 %v1370_v37  ;;  %1373 = vmatprep.subr.bf16.mxu0 %v1372_v38  ;;  %v1919_v21 = vld [vmem:[%s2347_s0 + $0x58] sm:$0xff]  ;;  %v132_v23 = vld [vmem:[%s2348_s1 + $0x2c8] sm:$0xff]  ;;  %v1928_v24 = vld [vmem:[%s2347_s0 + $0x40] sm:$0xff]  ;;  %v1418_v31 = vpack.c.bf16 %v146_v19, %v145_v13 }
  0x24   :  { %1405 = vmatprep.subr.bf16.mxu1 %v1404_v42  ;;  %v1933_v25 = vld [vmem:[%s2347_s0 + $0x50] sm:$0xff]  ;;  %v163_v26 = vld [vmem:[%s2348_s1 + $0x3c0] sm:$0xff]  ;;  %v164_v27 = vld [vmem:[%s2348_s1 + $0x3c8] sm:$0xff]  ;;  %v1388_v32 = vpack.c.bf16 %v132_v23, %v131_v20 }
  0x25   :  { %236 = vmatmul.mubr.f32.vlgmr.msra.gmra.mrb[0].mxu0 %v1839_v48  ;;  %v115_v29 = vld [vmem:[%s2348_s1 + $0x240] sm:$0xff]  ;;  %v116_v30 = vld [vmem:[%s2348_s1 + $0x248] sm:$0xff]  ;;  %v1420_v36 = vpack.c.bf16 %v164_v27, %v163_v26  ;;  %v133_v37 = vld [vmem:[%s2348_s1 + $0x2d0] sm:$0xff] }
  0x26   :  { %311 = vmatmul.mubr.f32.vlgmr.msra.gmra.mrb[0].mxu1 %v1844_v49  ;;  %1375 = vmatpush3.bf16.msra.mxu0 %v1374_v50  ;;  %v147_v33 = vld [vmem:[%s2348_s1 + $0x340] sm:$0xff]  ;;  %v148_v34 = vld [vmem:[%s2348_s1 + $0x348] sm:$0xff]  ;;  %v134_v38 = vld [vmem:[%s2348_s1 + $0x2d8] sm:$0xff]  ;;  %v1390_v42 = vpack.c.bf16 %v116_v30, %v115_v29 }
  0x27   :  { %1407 = vmatpush3.bf16.msra.mxu1 %v1406_v51  ;;  %1377 = vmatprep.subr.bf16.mxu0 %v1376_v52  ;;  %v1959_v35 = vld [vmem:[%s2347_s0 + $0x28] sm:$0xff]  ;;  %v1971_v39 = vld [vmem:[%s2347_s0 + $0x38] sm:$0xff]  ;;  %v165_v40 = vld [vmem:[%s2348_s1 + $0x3d0] sm:$0xff] }
  0x28   :  { %1409 = vmatprep.subr.bf16.mxu1 %v1408_v56  ;;  %240 = vmatprep.mubr.f32.mxu0 %v1908_v14  ;;  %v166_v41 = vld [vmem:[%s2348_s1 + $0x3d8] sm:$0xff] }
  0x29   :  { %315 = vmatprep.mubr.f32.mxu1 %v1919_v21  ;;  %241 = vmatmul.mubr.f32.gmra.mrb[2].mxu0 %v1928_v24 }
  0x2a   :  { %1379 = vmatpush3.bf16.msra.mxu0 %v1378_v62  ;;  %316 = vmatmul.mubr.f32.gmra.mrb[2].mxu1 %v1933_v25 }
  0x2b   :  { %1411 = vmatpush3.bf16.msra.mxu1 %v1410_v63  ;;  %1381 = vmatprep.subr.bf16.mxu0 %v1380_v0 }
  0x2c   :  { %1413 = vmatprep.subr.bf16.mxu1 %v1412_v4  ;;  %385 = vmatprep.mubr.f32.mxu0 %v1959_v35 }
  0x2d   :  { %460 = vmatprep.mubr.f32.mxu1 %v1971_v39 }
  0x2e   :  { %1383 = vmatpush3.bf16.msra.mxu0 %v1382_v11 }
  0x2f   :  { %1415 = vmatpush3.bf16.msra.mxu1 %v1414_v15  ;;  %1385 = vmatprep.subr.bf16.mxu0 %v1384_v18 }
  0x30   :  { %1417 = vmatprep.subr.bf16.mxu1 %v1416_v22 }
  0x32   :  { %1387 = vmatpush3.bf16.msra.mxu0 %v1386_v28 }
  0x33   :  { %12 = vsyncpa [#allocation3], 0  ;;  %1419 = vmatpush3.bf16.msra.mxu1 %v1418_v31  ;;  %1389 = vmatprep.subr.bf16.mxu0 %v1388_v32  ;;  %v1422_v43 = vpack.c.bf16 %v148_v34, %v147_v33  ;;  %v1392_v44 = vpack.c.bf16 %v134_v38, %v133_v37  ;;  %v117_v45 = vld [vmem:[%s2348_s1 + $0x250] sm:$0xff]  ;;  %v118_v46 = vld [vmem:[%s2348_s1 + $0x258] sm:$0xff]  ;;  %v1424_v50 = vpack.c.bf16 %v166_v41, %v165_v40  ;;  %vm585_vm0 = vcmask 1043456  }
  0x34   :  { %v149_v47 = vld [vmem:[%s2348_s1 + $0x350] sm:$0xff]  ;;  %1421 = vmatprep.subr.bf16.mxu1 %v1420_v36  ;;  %v150_v51 = vld [vmem:[%s2348_s1 + $0x358] sm:$0xff]  ;;  %v135_v52 = vld [vmem:[%s2348_s1 + $0x2e0] sm:$0xff]  ;;  %v1394_v56 = vpack.c.bf16 %v118_v46, %v117_v45  ;;  %vm486_vm1 = vcmask 523264   ;;  %vm578_vm2 = vcmask 31744  }
  0x35   :  { %v136_v53 = vld [vmem:[%s2348_s1 + $0x2e8] sm:$0xff]  ;;  %v167_v54 = vld [vmem:[%s2348_s1 + $0x3e0] sm:$0xff]  ;;  %v1426_v57 = vpack.c.bf16 %v150_v51, %v149_v47  ;;  %v137_v0 = vld [vmem:[%s2348_s1 + $0x2f0] sm:$0xff] }
  0x36   :  { %v168_v55 = vld [vmem:[%s2348_s1 + $0x3e8] sm:$0xff]  ;;  %1391 = vmatpush3.bf16.msra.mxu0 %v1390_v42  ;;  %v1396_v58 = vpack.c.bf16 %v136_v53, %v135_v52  ;;  %v119_v59 = vld [vmem:[%s2348_s1 + $0x260] sm:$0xff]  ;;  %v138_v1 = vld [vmem:[%s2348_s1 + $0x2f8] sm:$0xff] }
  0x37   :  { %1423 = vmatpush3.bf16.msra.mxu1 %v1422_v43  ;;  %1393 = vmatprep.subr.bf16.mxu0 %v1392_v44  ;;  %v120_v60 = vld [vmem:[%s2348_s1 + $0x268] sm:$0xff]  ;;  %v151_v61 = vld [vmem:[%s2348_s1 + $0x360] sm:$0xff]  ;;  %v1428_v62 = vpack.c.bf16 %v168_v55, %v167_v54  ;;  %v169_v2 = vld [vmem:[%s2348_s1 + $0x3f0] sm:$0xff]  ;;  %v1400_v6 = vpack.c.bf16 %v138_v1, %v137_v0 }
  0x38   :  { %1425 = vmatprep.subr.bf16.mxu1 %v1424_v50  ;;  %v152_v63 = vld [vmem:[%s2348_s1 + $0x368] sm:$0xff]  ;;  %v170_v3 = vld [vmem:[%s2348_s1 + $0x3f8] sm:$0xff]  ;;  %v1398_v4 = vpack.c.bf16 %v120_v60, %v119_v59  ;;  %v121_v7 = vld [vmem:[%s2348_s1 + $0x270] sm:$0xff] }
  0x39   :  { %v1430_v5 = vpack.c.bf16 %v152_v63, %v151_v61  ;;  %v122_v8 = vld [vmem:[%s2348_s1 + $0x278] sm:$0xff]  ;;  %v1432_v9 = vpack.c.bf16 %v170_v3, %v169_v2  ;;  %v153_v10 = vld [vmem:[%s2348_s1 + $0x370] sm:$0xff]  ;;  %v2043_v15 = vld [vmem:[%s2347_s0 + $0x20] sm:$0xff] }
  0x3a   :  { %1395 = vmatpush3.bf16.msra.mxu0 %v1394_v56  ;;  %v154_v11 = vld [vmem:[%s2348_s1 + $0x378] sm:$0xff]  ;;  %v1402_v12 = vpack.c.bf16 %v122_v8, %v121_v7  ;;  %v2048_v18 = vld [vmem:[%s2347_s0 + $0x30] sm:$0xff]  ;;  %v2053_v19 = vld [vmem:[%s2347_s0 + $0x68] sm:$0xff] }
  0x3b   :  { %1427 = vmatpush3.bf16.msra.mxu1 %v1426_v57  ;;  %1397 = vmatprep.subr.bf16.mxu0 %v1396_v58  ;;  %v1434_v13 = vpack.c.bf16 %v154_v11, %v153_v10  ;;  %v2058_v20 = vld [vmem:[%s2347_s0 + $0x78] sm:$0xff]  ;;  %v2066_v22 = vld [vmem:[%s2347_s0 + $0x60] sm:$0xff]  ;;  %v2072_v23 = vld [vmem:[%s2347_s0 + $0x70] sm:$0xff] }
  0x3c   :  { %1429 = vmatprep.subr.bf16.mxu1 %v1428_v62  ;;  %v471_v26 = vld [vmem:[%s2350_s3] sm:$0xff]  ;;  %v472_v27 = vld [vmem:[%s2350_s3 + $0x8] sm:$0xff]  ;;  %v473_v29 = vld [vmem:[%s2350_s3 + $0x10] sm:$0xff] }
  0x3d   :  { %v1436_v28 = vpack.c.bf16 %v472_v27, %v471_v26  ;;  %v474_v30 = vld [vmem:[%s2350_s3 + $0x18] sm:$0xff]  ;;  %v475_v32 = vld [vmem:[%s2350_s3 + $0x20] sm:$0xff]  ;;  %v476_v33 = vld [vmem:[%s2350_s3 + $0x28] sm:$0xff] }
  0x3e   :  { %1399 = vmatpush3.bf16.msra.mxu0 %v1398_v4  ;;  %v1440_v31 = vpack.c.bf16 %v474_v30, %v473_v29  ;;  %v1444_v34 = vpack.c.bf16 %v476_v33, %v475_v32  ;;  %v477_v36 = vld [vmem:[%s2350_s3 + $0x30] sm:$0xff]  ;;  %v478_v37 = vld [vmem:[%s2350_s3 + $0x38] sm:$0xff]  ;;  %v570_v40 = vld [vmem:[%s2352_s5] sm:$0xf] }
  0x3f   :  { %1431 = vmatpush3.bf16.msra.mxu1 %v1430_v5  ;;  %1401 = vmatprep.subr.bf16.mxu0 %v1400_v6  ;;  %v1448_v38 = vpack.c.bf16 %v478_v37, %v477_v36  ;;  %v685_v29 = vld [vmem:[%s2349_s2 + $0x48] sm:$0xff]  ;;  %v679_v30 = vld [vmem:[%s2349_s2 + $0x18] sm:$0xff]  ;;  %v676_v33 = vld [vmem:[%s2349_s2] sm:$0xff] }
  0x40   :  { %1433 = vmatprep.subr.bf16.mxu1 %v1432_v9  ;;  %v1102_v9 = vld [vmem:[%s2351_s4] ss:$0 sm:$0xff]  ;;  %v687_v32 = vld [vmem:[%s2349_s2 + $0x58] sm:$0xff] }
  0x41   :  { %v1468_v36 = vpack.c.bf16 %v687_v32, %v679_v30  ;;  %v683_v32 = vld [vmem:[%s2349_s2 + $0x38] sm:$0xff] }
  0x42   :  { %1403 = vmatpush3.bf16.msra.mxu0 %v1402_v12 }
  0x43   :  { %1435 = vmatpush3.bf16.msra.mxu1 %v1434_v13  ;;  %1437 = vmatprep.subr.bf16.mxu0 %v1436_v28 }
  0x44   :  { %1303 = vmatprep.subr.msk.mxu1 %vm585_vm0, %v570_v40 }
  0x45   :  { %386 = vmatmul.mubr.f32.vlgmr.msra.gmra.mrb[4].mxu0 %v2043_v15 }
  0x46   :  { %461 = vmatmul.mubr.f32.vlgmr.msra.gmra.mrb[4].mxu1 %v2048_v18  ;;  %390 = vmatprep.mubr.f32.mxu0 %v2053_v19 }
  0x47   :  { %465 = vmatprep.mubr.f32.mxu1 %v2058_v20  ;;  %1439 = vmatpush3.bf16.msra.mxu0 %v1436_v28  ;;  %v677_v28 = vld [vmem:[%s2349_s2 + $0x8] sm:$0xff] }
  0x48   :  { %1441 = vmatprep.subr.bf16.mxu0 %v1440_v31  ;;  %1304 = vmatpush3.msk.msra.mxu1 %vm585_vm0, %v570_v40  ;;  %v686_v40 = vld [vmem:[%s2349_s2 + $0x50] sm:$0xff] }
  0x49   :  { %391 = vmatmul.mubr.f32.gmra.mrb[6].mxu0 %v2066_v22 }
  0x4a   :  { %466 = vmatmul.mubr.f32.gmra.mrb[6].mxu1 %v2072_v23 }
  0x4b   :  { %1443 = vmatpush3.bf16.msra.mxu0 %v1440_v31  ;;  %v1452_v31 = vpack.c.bf16 %v685_v29, %v677_v28  ;;  %v681_v28 = vld [vmem:[%s2349_s2 + $0x28] sm:$0xff] }
  0x4c   :  { %1445 = vmatprep.subr.bf16.mxu0 %v1444_v34  ;;  %v689_v29 = vld [vmem:[%s2349_s2 + $0x68] sm:$0xff] }
  0x4d   :  { %1453 = vmatprep.subr.bf16.mxu1 %v1452_v31  ;;  %v1484_v31 = vpack.c.bf16 %v689_v29, %v681_v28  ;;  %v729_v28 = vld [vmem:[%s2349_s2 + $0x1a8] sm:$0xff] }
  0x4f   :  { %1447 = vmatpush3.bf16.msra.mxu0 %v1444_v34  ;;  %v684_v34 = vld [vmem:[%s2349_s2 + $0x40] sm:$0xff] }
  0x50   :  { %1449 = vmatprep.subr.bf16.mxu0 %v1448_v38  ;;  %v1454_v37 = vpack.c.bf16 %v684_v34, %v676_v33  ;;  %v691_v33 = vld [vmem:[%s2349_s2 + $0x78] sm:$0xff] }
  0x51   :  { %v1500_v34 = vpack.c.bf16 %v691_v33, %v683_v32  ;;  %v739_v32 = vld [vmem:[%s2349_s2 + $0x1f8] sm:$0xff] }
  0x53   :  { %1451 = vmatpush3.bf16.msra.mxu0 %v1448_v38  ;;  %v678_v38 = vld [vmem:[%s2349_s2 + $0x10] sm:$0xff] }
  0x54   :  { %1469 = vmatprep.subr.bf16.mxu0 %v1468_v36  ;;  %v1105_v36 = vld [vmem:[%s2353_s6] ss:$0 sm:$0xff] }
  0xf8   :  { %v1151_v41 = vpop.f32.mrb[0].mxu0 }
  0xf9   :  { %v1189_v42 = vpop.f32.mrb[0].mxu1  ;;  %v1152_v43 = vpop.f32.mrb[1].mxu0 }
  0xfa   :  { %v1153_v44 = vadd.f32 %v1152_v43, %v1151_v41  ;;  %v1190_v45 = vpop.f32.mrb[1].mxu1  ;;  %v1470_v41 = vpack.c.bf16 %v686_v40, %v678_v38  ;;  %v701_v43 = vld [vmem:[%s2349_s2 + $0xc8] sm:$0xff] }
  0xfb   :  { %v1191_v46 = vadd.f32 %v1190_v45, %v1189_v42  ;;  %v693_v42 = vld [vmem:[%s2349_s2 + $0x88] sm:$0xff] }
  0xfc   :  { %v1154_v50 = vpop.f32.mrb[2].mxu0  ;;  %v1456_v45 = vpack.c.bf16 %v701_v43, %v693_v42 }
  0xfd   :  { %v313_v47 = vadd.f32 %v1191_v46, %v1153_v44  ;;  %v1192_v51 = vpop.f32.mrb[2].mxu1  ;;  %v1155_v52 = vpop.f32.mrb[3].mxu0  ;;  %v695_v44 = vld [vmem:[%s2349_s2 + $0x98] sm:$0xff] }
  0xfe   :  { %v1156_v53 = vadd.f32 %v1155_v52, %v1154_v50  ;;  %v1193_v54 = vpop.f32.mrb[3].mxu1  ;;  %v703_v46 = vld [vmem:[%s2349_s2 + $0xd8] sm:$0xff]  ;;  %v700_v50 = vld [vmem:[%s2349_s2 + $0xc0] sm:$0xff] }
  0xff   :  { %v1194_v55 = vadd.f32 %v1193_v54, %v1192_v51  ;;  %v1472_v51 = vpack.c.bf16 %v703_v46, %v695_v44  ;;  %v702_v54 = vld [vmem:[%s2349_s2 + $0xd0] sm:$0xff] }
 0x101   :  { %v318_v56 = vadd.f32 %v1194_v55, %v1156_v53  ;;  %v694_v53 = vld [vmem:[%s2349_s2 + $0x90] sm:$0xff] }
 0x102   :  { %v1474_v55 = vpack.c.bf16 %v702_v54, %v694_v53  ;;  %v690_v53 = vld [vmem:[%s2349_s2 + $0x70] sm:$0xff]  ;;  %v697_v54 = vld [vmem:[%s2349_s2 + $0xa8] sm:$0xff] }
 0x118   :  { %v1227_v57 = vpop.f32.mrb[4].mxu0 }
 0x119   :  { %v1228_v58 = vpop.f32.mrb[5].mxu0  ;;  %v1265_v59 = vpop.f32.mrb[4].mxu1 }
 0x11a   :  { %v1229_v60 = vadd.f32 %v1228_v58, %v1227_v57  ;;  %v1266_v61 = vpop.f32.mrb[5].mxu1  ;;  %v717_v57 = vld [vmem:[%s2349_s2 + $0x148] sm:$0xff]  ;;  %v711_v58 = vld [vmem:[%s2349_s2 + $0x118] sm:$0xff] }
 0x11b   :  { %v1267_v62 = vadd.f32 %v1266_v61, %v1265_v59  ;;  %v708_v61 = vld [vmem:[%s2349_s2 + $0x100] sm:$0xff] }
 0x11c   :  { %v388_v63 = vadd.f32 %v1229_v60, %v313_v47  ;;  %v1230_v0 = vpop.f32.mrb[6].mxu0  ;;  %v692_v47 = vld [vmem:[%s2349_s2 + $0x80] sm:$0xff]  ;;  %v719_v60 = vld [vmem:[%s2349_s2 + $0x158] sm:$0xff] }
 0x11d   :  { %v1231_v1 = vpop.f32.mrb[7].mxu0  ;;  %v1268_v2 = vpop.f32.mrb[6].mxu1  ;;  %v1458_v52 = vpack.c.bf16 %v700_v50, %v692_v47  ;;  %v680_v50 = vld [vmem:[%s2349_s2 + $0x20] sm:$0xff] }
 0x11e   :  { %v463_v3 = vadd.f32 %v1267_v62, %v388_v63  ;;  %v1232_v4 = vadd.f32 %v1231_v1, %v1230_v0  ;;  %v1269_v5 = vpop.f32.mrb[7].mxu1  ;;  %v716_v62 = vld [vmem:[%s2349_s2 + $0x140] sm:$0xff]  ;;  %v1552_v63 = vmov 0.0   ;;  %v1476_v0 = vpack.c.bf16 %v719_v60, %v711_v58 }
 0x11f   :  { %v1270_v6 = vadd.f32 %v1269_v5, %v1268_v2  ;;  %v1462_v1 = vpack.c.bf16 %v716_v62, %v708_v61  ;;  %v710_v2 = vld [vmem:[%s2349_s2 + $0x110] sm:$0xff]  ;;  %v696_v60 = vld [vmem:[%s2349_s2 + $0xa0] sm:$0xff] }
 0x120   :  { %v393_v7 = vadd.f32 %v1232_v4, %v318_v56  ;;  %1300 = vmatprep.mubr.msk.f32.mxu0 %vm486_vm1, %v463_v3  ;;  %v709_v56 = vld [vmem:[%s2349_s2 + $0x108] sm:$0xff]  ;;  %v718_v3 = vld [vmem:[%s2349_s2 + $0x150] sm:$0xff]  ;;  %v704_v61 = vld [vmem:[%s2349_s2 + $0xe0] sm:$0xff] }
 0x121   :  { %v1460_v59 = vpack.c.bf16 %v717_v57, %v709_v56  ;;  %v725_v4 = vld [vmem:[%s2349_s2 + $0x188] sm:$0xff]  ;;  %v1478_v5 = vpack.c.bf16 %v718_v3, %v710_v2  ;;  %v699_v56 = vld [vmem:[%s2349_s2 + $0xb8] sm:$0xff]  ;;  %v698_v62 = vld [vmem:[%s2349_s2 + $0xb0] sm:$0xff] }
 0x122   :  { %v468_v8 = vadd.f32 %v1270_v6, %v393_v7  ;;  %v733_v6 = vld [vmem:[%s2349_s2 + $0x1c8] sm:$0xff]  ;;  %v727_v7 = vld [vmem:[%s2349_s2 + $0x198] sm:$0xff] }
 0x123   :  { %v707_v57 = vld [vmem:[%s2349_s2 + $0xf8] sm:$0xff] }
 0x124   :  { %1301 = vmatmul.mubr.msk.f32.vlgmr.msra.gmra.mrb[8].mxu0 %vm486_vm1, %v468_v8  ;;  %v735_v8 = vld [vmem:[%s2349_s2 + $0x1d8] sm:$0xff] }
 0x125   :  { %1471 = vmatpush1.bf16.msra.mxu0 %v1470_v41  ;;  %887 = vmatprep.mubr.f32.mxu0 %v1552_v63 }
 0x126   :  { %1473 = vmatprep.subr.bf16.mxu0 %v1472_v51  ;;  %v688_v51 = vld [vmem:[%s2349_s2 + $0x60] sm:$0xff] }
 0x127   :  { %v1486_v58 = vpack.c.bf16 %v688_v51, %v680_v50 }
 0x129   :  { %1475 = vmatpush1.bf16.msra.mxu0 %v1474_v55  ;;  %v705_v55 = vld [vmem:[%s2349_s2 + $0xe8] sm:$0xff] }
 0x12a   :  { %1477 = vmatprep.subr.bf16.mxu0 %v1476_v0  ;;  %v706_v0 = vld [vmem:[%s2349_s2 + $0xf0] sm:$0xff]  ;;  %v1488_v3 = vpack.c.bf16 %v705_v55, %v697_v54 }
 0x12d   :  { %1479 = vmatpush1.bf16.msra.mxu0 %v1478_v5  ;;  %v721_v5 = vld [vmem:[%s2349_s2 + $0x168] sm:$0xff] }
 0x1f7   :  { %v1302_v10 = vpop.f32.mrb[8].mxu0 }
 0x1f8   :  { %v565_v11 = vadd.f32 %v1302_v10, %v1102_v9  ;;  %v559_v12 = vpop.f32.mrb[9].mxu0  ;;  %v1480_v10 = vpack.c.bf16 %v735_v8, %v727_v7  ;;  %v723_v7 = vld [vmem:[%s2349_s2 + $0x178] sm:$0xff]  ;;  %v1490_v8 = vpack.c.bf16 %v704_v61, %v696_v60 }
 0x1f9   :  { %v560_v13 = vadd.f32 %v1102_v9, %v559_v12  ;;  %v1464_v9 = vpack.c.bf16 %v733_v6, %v725_v4  ;;  %v732_v12 = vld [vmem:[%s2349_s2 + $0x1c0] sm:$0xff]  ;;  %v1504_v4 = vpack.c.bf16 %v707_v57, %v699_v56  ;;  %v715_v6 = vld [vmem:[%s2349_s2 + $0x138] sm:$0xff] }
 0x1fa   :  { %v569_v27 = vmax.f32 %v565_v11, 0.0  ;;  %v724_v11 = vld [vmem:[%s2349_s2 + $0x180] sm:$0xff]  ;;  %1481 = vmatprep.subr.bf16.mxu0 %v1480_v10 }
 0x1fb   :  { %v568_v26 = vmax.f32 %v560_v13, 0.0  ;;  %v726_v13 = vld [vmem:[%s2349_s2 + $0x190] sm:$0xff]  ;;  %v712_v10 = vld [vmem:[%s2349_s2 + $0x120] sm:$0xff] }
 0x1fd   :  { %1305 = vmatprep.mubr.msk.f32.mxu1 %vm578_vm2, %v568_v26  ;;  %v1466_v26 = vpack.c.bf16 %v732_v12, %v724_v11  ;;  %v720_v11 = vld [vmem:[%s2349_s2 + $0x160] sm:$0xff] }
 0x1fe   :  { %1306 = vmatmul.mubr.msk.f32.vlgmr.msra.gmra.mrb[8].mxu1 %vm578_vm2, %v569_v27  ;;  %v734_v27 = vld [vmem:[%s2349_s2 + $0x1d0] sm:$0xff]  ;;  %v1494_v33 = vpack.c.bf16 %v720_v11, %v712_v10 }
 0x1ff   :  { %1455 = vmatpush1.bf16.msra.mxu1 %v1454_v37  ;;  %810 = vmatprep.mubr.f32.mxu1 %v1552_v63  ;;  %v1482_v30 = vpack.c.bf16 %v734_v27, %v726_v13  ;;  %v1508_v13 = vpack.c.bf16 %v723_v7, %v715_v6  ;;  %v722_v27 = vld [vmem:[%s2349_s2 + $0x170] sm:$0xff] }
 0x200   :  { %1457 = vmatprep.subr.bf16.mxu1 %v1456_v45 }
 0x201   :  { %1483 = vmatpush1.bf16.msra.mxu0 %v1482_v30  ;;  %v737_v30 = vld [vmem:[%s2349_s2 + $0x1e8] sm:$0xff] }
 0x202   :  { %1501 = vmatprep.subr.bf16.mxu0 %v1500_v34 }
 0x203   :  { %1459 = vmatpush1.bf16.msra.mxu1 %v1458_v52  ;;  %v682_v52 = vld [vmem:[%s2349_s2 + $0x30] sm:$0xff] }
 0x204   :  { %1461 = vmatprep.subr.bf16.mxu1 %v1460_v59  ;;  %v1502_v59 = vpack.c.bf16 %v690_v53, %v682_v52 }
 0x207   :  { %1463 = vmatpush1.bf16.msra.mxu1 %v1462_v1  ;;  %v713_v1 = vld [vmem:[%s2349_s2 + $0x128] sm:$0xff] }
 0x208   :  { %1465 = vmatprep.subr.bf16.mxu1 %v1464_v9  ;;  %v1506_v9 = vpack.c.bf16 %v706_v0, %v698_v62  ;;  %v1492_v12 = vpack.c.bf16 %v721_v5, %v713_v1 }
 0x20b   :  { %1467 = vmatpush1.bf16.msra.mxu1 %v1466_v26  ;;  %v714_v26 = vld [vmem:[%s2349_s2 + $0x130] sm:$0xff] }
 0x20c   :  { %1485 = vmatprep.subr.bf16.mxu1 %v1484_v31  ;;  %v731_v31 = vld [vmem:[%s2349_s2 + $0x1b8] sm:$0xff]  ;;  %v1510_v34 = vpack.c.bf16 %v722_v27, %v714_v26 }
 0x2d1   :  { %v1307_v37 = vpop.f32.mrb[8].mxu1 }
 0x2d2   :  { %v661_v38 = vadd.f32 %v1307_v37, %v1105_v36  ;;  %v655_v40 = vpop.f32.mrb[9].mxu1  ;;  %v1496_v37 = vpack.c.bf16 %v737_v30, %v729_v28 }
 0x2d3   :  { %v656_v41 = vadd.f32 %v1105_v36, %v655_v40  ;;  %v728_v36 = vld [vmem:[%s2349_s2 + $0x1a0] sm:$0xff] }
 0x2d4   :  { %v1110_v42 = vmul.f32 -1.442695, %v661_v38  ;;  %v1512_v38 = vpack.c.bf16 %v739_v32, %v731_v31  ;;  %v736_v40 = vld [vmem:[%s2349_s2 + $0x1e0] sm:$0xff] }
 0x2d5   :  { %v1109_v43 = vmul.f32 -1.442695, %v656_v41  ;;  %v730_v41 = vld [vmem:[%s2349_s2 + $0x1b0] sm:$0xff] }
 0x2d6   :  { %1520 = vpow2.f32 %v1110_v42  ;;  %v738_v42 = vld [vmem:[%s2349_s2 + $0x1f0] sm:$0xff]  ;;  %s1553_s2 = smov [#allocation2]  }
 0x2d7   :  { %1522 = vpow2.f32 %v1109_v43  ;;  %v1498_v43 = vpack.c.bf16 %v736_v40, %v728_v36  ;;  %s1091_s19 = sshll.u32 %s1553_s2, 4  ;;  %s1092_s19 = int_to_ptr.vmem [resolvable:$true] %s1091_s19 }
 0x2d8   :  { %s1528_s20 = scalar_lea.vmem %s1092_s19, 2048  ;;  %p1533_p1 = scmp.lt.s32.totalorder %s1092_s19, %s1092_s19 }
 0x2d9   :  { %p1529_p0 = scmp.ne.s32.totalorder %s1092_s19, %s1528_s20  ;;  %p1534_p2 = scmp.lt.s32.totalorder %s1528_s20, %s1528_s20 }
 0x2db   :  { %p1535_p3 = por %p1534_p2, %p1533_p1 }
 0x2dd   :  { %p1536_p4 = pnand %p1535_p3, %p1529_p0 }
 0x2e0   :  { %v1521_v44 = vpop.eup %1520 }
 0x2e1   :  { %v1523_v45 = vpop.eup %1522  ;;  %v671_v47 = vadd.f32 1.0, %v1521_v44  ;;  %v1514_v44 = vpack.c.bf16 %v738_v42, %v730_v41 }
 0x2e2   :  { %v670_v46 = vadd.f32 1.0, %v1523_v45 }
 0x2e4   :  { %1524 = vrcp.f32 %v670_v46 }
 0x2e5   :  { %1526 = vrcp.f32 %v671_v47 }
 0x2ee   :  { %v1525_v2 = vpop.eup %1524 }
 0x2ef   :  { %1111 = vmatmul.mubr.msk.f32.vlgmr.msra.gmra.mrb[10].mxu1 %vm486_vm1, %v1525_v2  ;;  %1113 = vmatmul.mubr.msk.f32.vlgmr.msra.gmra.mrb[10].mxu0 %vm486_vm1, %v1525_v2  ;;  %v1527_v29 = vpop.eup %1526 }
 0x2f0   :  { %1487 = vmatpush1.bf16.msra.mxu1 %v1486_v58  ;;  %1503 = vmatpush1.bf16.msra.mxu0 %v1502_v59 }
 0x2f1   :  { %816 = vmatprep.mubr.f32.mxu1 %v1552_v63  ;;  %893 = vmatprep.mubr.f32.mxu0 %v1552_v63 }
 0x2f2   :  { %1489 = vmatprep.subr.bf16.mxu1 %v1488_v3  ;;  %1505 = vmatprep.subr.bf16.mxu0 %v1504_v4 }
 0x2f3   :  { %1112 = vmatmul.mubr.msk.f32.gmra.mrb[12].mxu1 %vm486_vm1, %v1527_v29  ;;  %1114 = vmatmul.mubr.msk.f32.gmra.mrb[12].mxu0 %vm486_vm1, %v1527_v29 }
 0x2f4   :  { %1491 = vmatpush1.bf16.msra.mxu1 %v1490_v8  ;;  %1507 = vmatpush1.bf16.msra.mxu0 %v1506_v9 }
 0x2f5   :  { %1493 = vmatprep.subr.bf16.mxu1 %v1492_v12  ;;  %1509 = vmatprep.subr.bf16.mxu0 %v1508_v13 }
 0x2f6   :  { %964 = vmatprep.mubr.f32.mxu1 %v1552_v63  ;;  %1041 = vmatprep.mubr.f32.mxu0 %v1552_v63 }
 0x2f8   :  { %1495 = vmatpush1.bf16.msra.mxu1 %v1494_v33  ;;  %1511 = vmatpush1.bf16.msra.mxu0 %v1510_v34 }
 0x2f9   :  { %1497 = vmatprep.subr.bf16.mxu1 %v1496_v37  ;;  %1513 = vmatprep.subr.bf16.mxu0 %v1512_v38 }
 0x2fc   :  { %1499 = vmatpush1.bf16.msra.mxu1 %v1498_v43  ;;  %1515 = vmatpush1.bf16.msra.mxu0 %v1514_v44 }
 0x2ff   :  { %1115 = vmatmul.mubr.msk.f32.vlgmr.msra.gmra.mrb[14].mxu1 %vm486_vm1, %v1525_v2  ;;  %1117 = vmatmul.mubr.msk.f32.vlgmr.msra.gmra.mrb[14].mxu0 %vm486_vm1, %v1525_v2 }
 0x300   :  { %970 = vmatprep.mubr.f32.mxu1 %v1552_v63  ;;  %1047 = vmatprep.mubr.f32.mxu0 %v1552_v63 }
 0x303   :  { %1116 = vmatmul.mubr.msk.f32.gmra.mrb[16].mxu1 %vm486_vm1, %v1527_v29  ;;  %1118 = vmatmul.mubr.msk.f32.gmra.mrb[16].mxu0 %vm486_vm1, %v1527_v29 }
 0x3c2   :  { %v812_v45 = vpop.f32.mrb[10].mxu1  ;;  %v889_v46 = vpop.f32.mrb[10].mxu0 }
 0x3c3   :  { %v1054_v47 = vmul.f32 %v812_v45, %v1839_v48  ;;  %v1056_v50 = vmul.f32 %v889_v46, %v1844_v49  ;;  %v814_v51 = vpop.f32.mrb[11].mxu1  ;;  %v891_v52 = vpop.f32.mrb[11].mxu0 }
 0x3c4   :  { %v1055_v53 = vmul.f32 %v814_v51, %v1764_v16  ;;  %v1057_v54 = vmul.f32 %v891_v52, %v1769_v17 }
 0x3c5   :  { %1070 = vst [vmem:[#allocation2] sm:$0xff] %v1054_v47  ;;  %1072 = vst [vmem:[#allocation2 + $0x10] sm:$0xff] %v1056_v50 }
 0x3c6   :  { %1071 = vst [vmem:[#allocation2 + $0x8] sm:$0xff] %v1055_v53  ;;  %1073 = vst [vmem:[#allocation2 + $0x18] sm:$0xff] %v1057_v54  ;;  %v818_v63 = vpop.f32.mrb[12].mxu1  ;;  %v895_v55 = vpop.f32.mrb[12].mxu0 }
 0x3c7   :  { %v1062_v56 = vmul.f32 %v818_v63, %v1928_v24  ;;  %v1064_v57 = vmul.f32 %v895_v55, %v1933_v25  ;;  %v820_v58 = vpop.f32.mrb[13].mxu1  ;;  %v897_v48 = vpop.f32.mrb[13].mxu0 }
 0x3c8   :  { %v1063_v49 = vmul.f32 %v820_v58, %v1908_v14  ;;  %v1065_v59 = vmul.f32 %v897_v48, %v1919_v21 }
 0x3c9   :  { %1078 = vst [vmem:[#allocation2 + $0x40] sm:$0xff] %v1062_v56  ;;  %1080 = vst [vmem:[#allocation2 + $0x50] sm:$0xff] %v1064_v57 }
 0x3ca   :  { %1079 = vst [vmem:[#allocation2 + $0x48] sm:$0xff] %v1063_v49  ;;  %1081 = vst [vmem:[#allocation2 + $0x58] sm:$0xff] %v1065_v59 }
 0x3d2   :  { %v966_v16 = vpop.f32.mrb[14].mxu1  ;;  %v1043_v17 = vpop.f32.mrb[14].mxu0 }
 0x3d3   :  { %v1058_v60 = vmul.f32 %v966_v16, %v2043_v15  ;;  %v1060_v61 = vmul.f32 %v1043_v17, %v2048_v18  ;;  %v968_v62 = vpop.f32.mrb[15].mxu1  ;;  %v1045_v24 = vpop.f32.mrb[15].mxu0 }
 0x3d4   :  { %v1059_v25 = vmul.f32 %v968_v62, %v1959_v35  ;;  %v1061_v0 = vmul.f32 %v1045_v24, %v1971_v39 }
 0x3d5   :  { %1074 = vst [vmem:[#allocation2 + $0x20] sm:$0xff] %v1058_v60  ;;  %1076 = vst [vmem:[#allocation2 + $0x30] sm:$0xff] %v1060_v61 }
 0x3d6   :  { %1075 = vst [vmem:[#allocation2 + $0x28] sm:$0xff] %v1059_v25  ;;  %1077 = vst [vmem:[#allocation2 + $0x38] sm:$0xff] %v1061_v0  ;;  %v972_v14 = vpop.f32.mrb[16].mxu1  ;;  %v1049_v21 = vpop.f32.mrb[16].mxu0 }
 0x3d7   :  { %v1066_v1 = vmul.f32 %v972_v14, %v2066_v22  ;;  %v1068_v15 = vmul.f32 %v1049_v21, %v2072_v23  ;;  %v974_v2 = vpop.f32.mrb[17].mxu1  ;;  %v1051_v18 = vpop.f32.mrb[17].mxu0 }
 0x3d8   :  { %v1067_v3 = vmul.f32 %v974_v2, %v2053_v19  ;;  %v1069_v35 = vmul.f32 %v1051_v18, %v2058_v20 }
 0x3d9   :  { %1082 = vst [vmem:[#allocation2 + $0x60] sm:$0xff] %v1066_v1  ;;  %1084 = vst [vmem:[#allocation2 + $0x70] sm:$0xff] %v1068_v15 }
 0x3da   :  { %1083 = vst [vmem:[#allocation2 + $0x68] sm:$0xff] %v1067_v3  ;;  %1085 = vst [vmem:[#allocation2 + $0x78] sm:$0xff] %v1069_v35 }
 0x3db   :  { %1539 = shalt.err (!%p1536_p4)
}
 0x3dc   :  { %s1540_s23 = scalar_lea.hbm %s2354_s7, 2048 }
 0x3dd   :  { %p1541_p5 = scmp.ne.s32.totalorder %s2354_s7, %s1540_s23  ;;  %p1544_p6 = scmp.lt.u32.totalorder %s1540_s23, %s2354_s7 }
 0x3df   :  { %p1546_p7 = pnand %p1544_p6, %p1541_p5 }
 0x3e1   :  { %1549 = shalt.err (!%p1546_p7)
}
 0x3e2   :  { %s1554_s27 = smov 1024   ;;  %s1555_s28 = smov 64  }
 0x3e3   :  { %1097 = dma.vmem_to_hbm [thread:$0]  %s1092_s19, 2048, %s2354_s7, [#allocation3], %s1554_s27, %s1554_s27, %s1555_s28  }
 0x3e4   :  { %1550 = dma.done.wait [#allocation3], 2048  }
 0x3e5   :  { %1551 = vsyncadd [#allocation3], 4294965248 }
 0x3e6   :  { %1101 = vsyncpa [#allocation3], 1 }

</bundles_post_ra>
